<compile_context>
chip_gen: v6e
topology: v6e:2x2x1
jax: 0.10.0
libtpu: 0.0.40
codegen_flags: <defaults>
</compile_context>

<pallas_src>
import functools

import jax
import jax.numpy as jnp
from jax.experimental import pallas as pl
from jax.experimental.pallas import tpu as pltpu

# ----------------------------- model hyper-params -----------------------------
SEQ = 8          # sequence length
BATCH = 2        # batch size
D_MODEL = 32     # d_model
NHEAD = 4        # number of attention heads
D_HEAD = D_MODEL // NHEAD
D_FF = 64        # dim_feedforward
NUM_LAYERS = 2   # encoder depth
LN_EPS = 1e-5

# packed slabs ------------------------------------------------------------------
VEC_LANES = 128            # every small-vector field starts at lane 0 of a 128 row
N_VEC_FIELDS = 8           # b_in | b_o | b1 | b2 | ln1_g | ln1_b | ln2_g | ln2_b
W_ROWS = 3 * D_MODEL + D_FF   # w_in(D) | w_o(D) | w1(D) | w2(Dff) stacked on sublanes


# ------------------------------ shared math helper ------------------------------
def _layer_norm(x, gamma, beta, eps=LN_EPS):
    # biased variance with eps inside rsqrt, exactly like torch.nn.LayerNorm
    mu = jnp.mean(x, axis=-1, keepdims=True)
    xc = x - mu
    var = jnp.mean(xc * xc, axis=-1, keepdims=True)
    return xc * jax.lax.rsqrt(var + eps) * gamma + beta


# --------------------------- fused encoder Pallas kernel ------------------------
def fused_encoder_kernel(x_ref, w_ref, vec_ref, o_ref, *,
                         num_layers, batch, d_model, nhead, d_ff):
    d_head = d_model // nhead
    scale = 1.0 / (d_head ** 0.5)
    n_tok = x_ref.shape[0]                      # S * B, rows in (s, b) order

    # row offsets of the four weight fields inside the per-layer weight slab
    r_in, r_o, r_w1, r_w2 = 0, d_model, 2 * d_model, 3 * d_model

    x = x_ref[...]                              # (N, D) resident in vregs/VMEM

    # same-batch mask for rows in (s, b) order: batch id of row r is r % B.
    ri = jax.lax.broadcasted_iota(jnp.int32, (n_tok, n_tok), 0)
    rj = jax.lax.broadcasted_iota(jnp.int32, (n_tok, n_tok), 1)
    if (batch & (batch - 1)) == 0:              # power-of-two batch -> cheap AND
        bi = jnp.bitwise_and(ri, batch - 1)
        bj = jnp.bitwise_and(rj, batch - 1)
    else:
        bi = ri % batch
        bj = rj % batch
    same_batch = bi == bj                       # hoisted: reused by every layer/head

    for l in range(num_layers):                 # tiny L -> static unroll is fine
        # weights: aligned sublane-row / lane-0 slices straight from the VMEM ref
        w_in = w_ref[l, r_in:r_in + d_model, 0:3 * d_model]        # (D, 3D)
        w1 = w_ref[l, r_w1:r_w1 + d_model, 0:d_ff]                 # (D, Dff)
        w2 = w_ref[l, r_w2:r_w2 + d_ff, 0:d_model]                 # (Dff, D)

        # packed biases / LN params, every field starting at lane 0
        b_in = vec_ref[l, 0:1, 0:3 * d_model]
        b_o = vec_ref[l, 1:2, 0:d_model]
        b1 = vec_ref[l, 2:3, 0:d_ff]
        b2 = vec_ref[l, 3:4, 0:d_model]
        ln1_g = vec_ref[l, 4:5, 0:d_model]
        ln1_b = vec_ref[l, 5:6, 0:d_model]
        ln2_g = vec_ref[l, 6:7, 0:d_model]
        ln2_b = vec_ref[l, 7:8, 0:d_model]

        # ---- multi-head self-attention (q = k = v = x), all tokens at once ----
        qkv = jnp.dot(x, w_in, preferred_element_type=jnp.float32) + b_in   # (N, 3D)

        attn = jnp.zeros((n_tok, d_model), jnp.float32)
        for h in range(nhead):
            qh = qkv[:, h * d_head:(h + 1) * d_head] * scale                # (N, dh)
            kh = qkv[:, d_model + h * d_head:d_model + (h + 1) * d_head]
            vh = qkv[:, 2 * d_model + h * d_head:2 * d_model + (h + 1) * d_head]

            # scores over all S*B tokens; cross-batch pairs masked out below
            s = jax.lax.dot_general(qh, kh, (((1,), (1,)), ((), ())),
                                    preferred_element_type=jnp.float32)     # (N, N)
            s = jnp.where(same_batch, s, -1e30)
            m = jnp.max(s, axis=-1, keepdims=True)
            e = jnp.where(same_batch, jnp.exp(s - m), 0.0)
            denom = jnp.sum(e, axis=-1, keepdims=True)
            p = e / denom                     # exact softmax (attention weights,
                                              # discarded by the reference forward)
            ctx = jnp.dot(p, vh, preferred_element_type=jnp.float32)        # (N, dh)

            # head merge folded into the output projection: attn += ctx_h @ Wo[h]
            w_oh = w_ref[l, r_o + h * d_head:r_o + (h + 1) * d_head, 0:d_model]
            attn = attn + jnp.dot(ctx, w_oh, preferred_element_type=jnp.float32)
        attn = attn + b_o

        # ---- residual + LayerNorm 1 ----
        x = _layer_norm(x + attn, ln1_g, ln1_b)

        # ---- feed-forward: linear1 -> relu -> linear2 ----
        h1 = jnp.maximum(jnp.dot(x, w1, preferred_element_type=jnp.float32) + b1, 0.0)
        h2 = jnp.dot(h1, w2, preferred_element_type=jnp.float32) + b2

        # ---- residual + LayerNorm 2 ----
        x = _layer_norm(x + h2, ln2_g, ln2_b)

    # ---- final encoder norm (self.norm) ----
    fg = vec_ref[num_layers, 0:1, 0:d_model]
    fb = vec_ref[num_layers, 1:2, 0:d_model]
    o_ref[...] = _layer_norm(x, fg, fb).astype(o_ref.dtype)


# ------------------------------- JAX wrapper -----------------------------------
@functools.partial(jax.jit, static_argnames=("nhead",))
def transformer_encoder_return_attention(src_sbd, w_slab, vec_slab, *, nhead=NHEAD):
    """Forward pass of TransformerEncoderReturnAttention.

    src_sbd: (S, B, D) -- PyTorch batch_first=False convention.  Returns (S, B, D).
    """
    S, B, D = src_sbd.shape
    L = w_slab.shape[0]
    d_ff = w_slab.shape[1] - 3 * D

    x = src_sbd.reshape(S * B, D)       # free leading-dim reshape, rows in (s,b) order

    kern = functools.partial(
        fused_encoder_kernel, num_layers=L, batch=B, d_model=D, nhead=nhead, d_ff=d_ff)

    out = pl.pallas_call(
        kern,
        out_shape=jax.ShapeDtypeStruct((S * B, D), jnp.float32),
        grid_spec=pltpu.PrefetchScalarGridSpec(
            num_scalar_prefetch=0,
            grid=(1,),                                   # single fused program
            in_specs=[
                pl.BlockSpec((S * B, D), lambda i: (0, 0)),
                pl.BlockSpec(w_slab.shape, lambda i: (0, 0, 0)),
                pl.BlockSpec(vec_slab.shape, lambda i: (0, 0, 0)),
            ],
            out_specs=pl.BlockSpec((S * B, D), lambda i: (0, 0)),
        ),
        compiler_params=pltpu.CompilerParams(dimension_semantics=("arbitrary",)),
    )(x, w_slab, vec_slab)

    return out.reshape(S, B, D)         # free reshape back to (S, B, D)


# ------------------------------ param construction -----------------------------
def init_layer_params(key):
    ks = jax.random.split(key, 6)
    scale = 0.05
    return {
        # weights stored pre-transposed so the kernel computes x @ W (+ b)
        "w_in": scale * jax.random.normal(ks[0], (D_MODEL, 3 * D_MODEL), jnp.float32),
        "b_in": jnp.zeros((3 * D_MODEL,), jnp.float32),
        "w_o":  scale * jax.random.normal(ks[1], (D_MODEL, D_MODEL), jnp.float32),
        "b_o":  jnp.zeros((D_MODEL,), jnp.float32),
        "w1":   scale * jax.random.normal(ks[2], (D_MODEL, D_FF), jnp.float32),
        "b1":   0.01 * jax.random.normal(ks[3], (D_FF,), jnp.float32),
        "w2":   scale * jax.random.normal(ks[4], (D_FF, D_MODEL), jnp.float32),
        "b2":   0.01 * jax.random.normal(ks[5], (D_MODEL,), jnp.float32),
        "ln1_g": jnp.ones((D_MODEL,), jnp.float32),
        "ln1_b": jnp.zeros((D_MODEL,), jnp.float32),
        "ln2_g": jnp.ones((D_MODEL,), jnp.float32),
        "ln2_b": jnp.zeros((D_MODEL,), jnp.float32),
    }


def pack_params(layer_params, final_g, final_b):
    """Pack weights into one (L, 160, 128) slab and vectors into (L+1, 8, 128)."""
    L = len(layer_params)
    W = jnp.zeros((L, W_ROWS, VEC_LANES), jnp.float32)
    V = jnp.zeros((L + 1, N_VEC_FIELDS, VEC_LANES), jnp.float32)
    for i, p in enumerate(layer_params):
        W = W.at[i, 0:D_MODEL, 0:3 * D_MODEL].set(p["w_in"])
        W = W.at[i, D_MODEL:2 * D_MODEL, 0:D_MODEL].set(p["w_o"])
        W = W.at[i, 2 * D_MODEL:3 * D_MODEL, 0:D_FF].set(p["w1"])
        W = W.at[i, 3 * D_MODEL:3 * D_MODEL + D_FF, 0:D_MODEL].set(p["w2"])

        V = V.at[i, 0, 0:3 * D_MODEL].set(p["b_in"])
        V = V.at[i, 1, 0:D_MODEL].set(p["b_o"])
        V = V.at[i, 2, 0:D_FF].set(p["b1"])
        V = V.at[i, 3, 0:D_MODEL].set(p["b2"])
        V = V.at[i, 4, 0:D_MODEL].set(p["ln1_g"])
        V = V.at[i, 5, 0:D_MODEL].set(p["ln1_b"])
        V = V.at[i, 6, 0:D_MODEL].set(p["ln2_g"])
        V = V.at[i, 7, 0:D_MODEL].set(p["ln2_b"])
    V = V.at[L, 0, 0:D_MODEL].set(final_g)
    V = V.at[L, 1, 0:D_MODEL].set(final_b)
    return W, V


# ------------------------------ pure-JAX reference ------------------------------
def encoder_reference(src_sbd, layer_params, final_g, final_b):
    S, B, D = src_sbd.shape
    H, dh = NHEAD, D_MODEL // NHEAD
    x = src_sbd
    for p in layer_params:
        qkv = jnp.einsum('sbd,de->sbe', x, p["w_in"]) + p["b_in"]
        q = qkv[..., 0:D].reshape(S, B, H, dh) * (1.0 / dh ** 0.5)
        k = qkv[..., D:2 * D].reshape(S, B, H, dh)
        v = qkv[..., 2 * D:3 * D].reshape(S, B, H, dh)
        scores = jnp.einsum('sbhd,tbhd->bhst', q, k)
        probs = jax.nn.softmax(scores, axis=-1)
        ctx = jnp.einsum('bhst,tbhd->sbhd', probs, v).reshape(S, B, D)
        attn = jnp.einsum('sbd,de->sbe', ctx, p["w_o"]) + p["b_o"]
        x = _layer_norm(x + attn, p["ln1_g"], p["ln1_b"])
        h = jax.nn.relu(jnp.einsum('sbd,de->sbe', x, p["w1"]) + p["b1"])
        h = jnp.einsum('sbd,de->sbe', h, p["w2"]) + p["b2"]
        x = _layer_norm(x + h, p["ln2_g"], p["ln2_b"])
    return _layer_norm(x, final_g, final_b)


if __name__ == "__main__":
    root = jax.random.PRNGKey(0)
    k_src, *k_layers = jax.random.split(root, NUM_LAYERS + 1)

    # src has PyTorch (seq, batch, d_model) shape (batch_first=False default)
    src = jax.random.normal(k_src, (SEQ, BATCH, D_MODEL), jnp.float32)

    layer_params = [init_layer_params(k) for k in k_layers]
    final_gamma = jnp.ones((D_MODEL,), jnp.float32)
    final_beta = jnp.zeros((D_MODEL,), jnp.float32)

    w_slab, vec_slab = pack_params(layer_params, final_gamma, final_beta)

    out = transformer_encoder_return_attention(src, w_slab, vec_slab)
    out = jax.block_until_ready(out)

    assert out.shape == (SEQ, BATCH, D_MODEL)
    assert bool(jnp.all(jnp.isfinite(out)))

    ref = encoder_reference(src, layer_params, final_gamma, final_beta)
    max_err = float(jnp.max(jnp.abs(out - ref)))
    assert jnp.allclose(out, ref, rtol=1e-3, atol=1e-3), max_err

    print("KERNEL_OK")
</pallas_src>

<mosaic_0001>
module attributes {stable_mosaic.version = 11 : i64} {
  func.func @fused_encoder_kernel(%arg0: i32, %arg1: memref<16x32xf32, #tpu.memory_space<vmem>>, %arg2: memref<2x160x128xf32, #tpu.memory_space<vmem>>, %arg3: memref<3x8x128xf32, #tpu.memory_space<vmem>>, %arg4: memref<16x32xf32, #tpu.memory_space<vmem>>) attributes {dimension_semantics = [#tpu.dimension_semantics<arbitrary>], iteration_bounds = array<i64: 1>, scalar_prefetch = 0 : i64, scratch_operands = 0 : i64, tpu.core_type = #tpu.core_type<tc>, window_params = [{pipeline_mode = #tpu.pipeline_mode<synchronous>, transform_indices = @transform_0, window_bounds = array<i64: 16, 32>}, {pipeline_mode = #tpu.pipeline_mode<synchronous>, transform_indices = @transform_1, window_bounds = array<i64: 2, 160, 128>}, {pipeline_mode = #tpu.pipeline_mode<synchronous>, transform_indices = @transform_2, window_bounds = array<i64: 3, 8, 128>}, {pipeline_mode = #tpu.pipeline_mode<synchronous>, transform_indices = @transform_3, window_bounds = array<i64: 16, 32>}]} {
    %c0 = arith.constant 0 : index
    %c0_0 = arith.constant 0 : index
    %0 = vector.load %arg1[%c0, %c0_0] : memref<16x32xf32, #tpu.memory_space<vmem>>, vector<16x32xf32>
    %1 = tpu.iota {dimensions = array<i32: 0>} : vector<16x16xi32>
    %2 = tpu.iota {dimensions = array<i32: 1>} : vector<16x16xi32>
    %c1_i32 = arith.constant 1 : i32
    %3 = vector.broadcast %c1_i32 : i32 to vector<16x16xi32>
    %4 = arith.andi %1, %3 : vector<16x16xi32>
    %c1_i32_1 = arith.constant 1 : i32
    %5 = vector.broadcast %c1_i32_1 : i32 to vector<16x16xi32>
    %6 = arith.andi %2, %5 : vector<16x16xi32>
    %7 = arith.cmpi eq, %4, %6 : vector<16x16xi32>
    %c0_2 = arith.constant 0 : index
    %c0_3 = arith.constant 0 : index
    %c0_4 = arith.constant 0 : index
    %8 = vector.load %arg2[%c0_2, %c0_3, %c0_4] : memref<2x160x128xf32, #tpu.memory_space<vmem>>, vector<1x32x96xf32>
    %9 = vector.shape_cast %8 : vector<1x32x96xf32> to vector<32x96xf32>
    %c0_5 = arith.constant 0 : index
    %c64 = arith.constant 64 : index
    %c0_6 = arith.constant 0 : index
    %10 = vector.load %arg2[%c0_5, %c64, %c0_6] : memref<2x160x128xf32, #tpu.memory_space<vmem>>, vector<1x32x64xf32>
    %11 = vector.shape_cast %10 : vector<1x32x64xf32> to vector<32x64xf32>
    %c0_7 = arith.constant 0 : index
    %c96 = arith.constant 96 : index
    %c0_8 = arith.constant 0 : index
    %12 = vector.load %arg2[%c0_7, %c96, %c0_8] : memref<2x160x128xf32, #tpu.memory_space<vmem>>, vector<1x64x32xf32>
    %13 = vector.shape_cast %12 : vector<1x64x32xf32> to vector<64x32xf32>
    %c0_9 = arith.constant 0 : index
    %c0_10 = arith.constant 0 : index
    %c0_11 = arith.constant 0 : index
    %14 = vector.load %arg3[%c0_9, %c0_10, %c0_11] : memref<3x8x128xf32, #tpu.memory_space<vmem>>, vector<1x1x96xf32>
    %15 = vector.shape_cast %14 : vector<1x1x96xf32> to vector<1x96xf32>
    %c0_12 = arith.constant 0 : index
    %c1 = arith.constant 1 : index
    %c0_13 = arith.constant 0 : index
    %16 = vector.load %arg3[%c0_12, %c1, %c0_13] : memref<3x8x128xf32, #tpu.memory_space<vmem>>, vector<1x1x32xf32>
    %17 = vector.shape_cast %16 : vector<1x1x32xf32> to vector<1x32xf32>
    %c0_14 = arith.constant 0 : index
    %c2 = arith.constant 2 : index
    %c0_15 = arith.constant 0 : index
    %18 = vector.load %arg3[%c0_14, %c2, %c0_15] : memref<3x8x128xf32, #tpu.memory_space<vmem>>, vector<1x1x64xf32>
    %19 = vector.shape_cast %18 : vector<1x1x64xf32> to vector<1x64xf32>
    %c0_16 = arith.constant 0 : index
    %c3 = arith.constant 3 : index
    %c0_17 = arith.constant 0 : index
    %20 = vector.load %arg3[%c0_16, %c3, %c0_17] : memref<3x8x128xf32, #tpu.memory_space<vmem>>, vector<1x1x32xf32>
    %21 = vector.shape_cast %20 : vector<1x1x32xf32> to vector<1x32xf32>
    %c0_18 = arith.constant 0 : index
    %c4 = arith.constant 4 : index
    %c0_19 = arith.constant 0 : index
    %22 = vector.load %arg3[%c0_18, %c4, %c0_19] : memref<3x8x128xf32, #tpu.memory_space<vmem>>, vector<1x1x32xf32>
    %23 = vector.shape_cast %22 : vector<1x1x32xf32> to vector<1x32xf32>
    %c0_20 = arith.constant 0 : index
    %c5 = arith.constant 5 : index
    %c0_21 = arith.constant 0 : index
    %24 = vector.load %arg3[%c0_20, %c5, %c0_21] : memref<3x8x128xf32, #tpu.memory_space<vmem>>, vector<1x1x32xf32>
    %25 = vector.shape_cast %24 : vector<1x1x32xf32> to vector<1x32xf32>
    %c0_22 = arith.constant 0 : index
    %c6 = arith.constant 6 : index
    %c0_23 = arith.constant 0 : index
    %26 = vector.load %arg3[%c0_22, %c6, %c0_23] : memref<3x8x128xf32, #tpu.memory_space<vmem>>, vector<1x1x32xf32>
    %27 = vector.shape_cast %26 : vector<1x1x32xf32> to vector<1x32xf32>
    %c0_24 = arith.constant 0 : index
    %c7 = arith.constant 7 : index
    %c0_25 = arith.constant 0 : index
    %28 = vector.load %arg3[%c0_24, %c7, %c0_25] : memref<3x8x128xf32, #tpu.memory_space<vmem>>, vector<1x1x32xf32>
    %29 = vector.shape_cast %28 : vector<1x1x32xf32> to vector<1x32xf32>
    %cst = arith.constant dense<0.000000e+00> : vector<16x96xf32>
    %30 = tpu.matmul %0, %9, %cst {dimension_numbers = #tpu.dot_dimension_numbers<[1], [0], [0], [1], [0, 0, 1, 1], [], []>} : vector<16x32xf32>, vector<32x96xf32>, vector<16x96xf32> -> vector<16x96xf32>
    %31 = vector.broadcast %15 : vector<1x96xf32> to vector<16x96xf32>
    %32 = arith.addf %30, %31 : vector<16x96xf32>
    %cst_26 = arith.constant 0.000000e+00 : f32
    %33 = vector.broadcast %cst_26 : f32 to vector<16x32xf32>
    %34 = vector.extract_strided_slice %32 {offsets = [0, 0], sizes = [16, 8], strides = [1, 1]} : vector<16x96xf32> to vector<16x8xf32>
    %cst_27 = arith.constant 0.353553385 : f32
    %35 = vector.broadcast %cst_27 : f32 to vector<16x8xf32>
    %36 = arith.mulf %34, %35 : vector<16x8xf32>
    %37 = vector.extract_strided_slice %32 {offsets = [0, 32], sizes = [16, 8], strides = [1, 1]} : vector<16x96xf32> to vector<16x8xf32>
    %38 = vector.extract_strided_slice %32 {offsets = [0, 64], sizes = [16, 8], strides = [1, 1]} : vector<16x96xf32> to vector<16x8xf32>
    %cst_28 = arith.constant dense<0.000000e+00> : vector<16x16xf32>
    %39 = tpu.matmul %36, %37, %cst_28 {dimension_numbers = #tpu.dot_dimension_numbers<[1], [1], [0], [0], [0, 0, 1, 0], [], []>} : vector<16x8xf32>, vector<16x8xf32>, vector<16x16xf32> -> vector<16x16xf32>
    %cst_29 = arith.constant -1.000000e+30 : f32
    %40 = vector.broadcast %cst_29 : f32 to vector<16x16xf32>
    %41 = arith.select %7, %39, %40 : vector<16x16xi1>, vector<16x16xf32>
    %cst_30 = arith.constant dense<0xFF800000> : vector<16xf32>
    %42 = vector.multi_reduction <maximumf>, %41, %cst_30 [1] : vector<16x16xf32> to vector<16xf32>
    %43 = vector.shape_cast %42 : vector<16xf32> to vector<16x1xf32>
    %44 = vector.broadcast %43 : vector<16x1xf32> to vector<16x16xf32>
    %45 = arith.subf %41, %44 : vector<16x16xf32>
    %46 = math.exp %45 : vector<16x16xf32>
    %cst_31 = arith.constant 0.000000e+00 : f32
    %47 = vector.broadcast %cst_31 : f32 to vector<16x16xf32>
    %48 = arith.select %7, %46, %47 : vector<16x16xi1>, vector<16x16xf32>
    %cst_32 = arith.constant dense<0.000000e+00> : vector<16xf32>
    %49 = vector.multi_reduction <add>, %48, %cst_32 [1] : vector<16x16xf32> to vector<16xf32>
    %50 = vector.shape_cast %49 : vector<16xf32> to vector<16x1xf32>
    %51 = vector.broadcast %50 : vector<16x1xf32> to vector<16x16xf32>
    %52 = arith.divf %48, %51 : vector<16x16xf32>
    %cst_33 = arith.constant dense<0.000000e+00> : vector<16x8xf32>
    %53 = tpu.matmul %52, %38, %cst_33 {dimension_numbers = #tpu.dot_dimension_numbers<[1], [0], [0], [1], [0, 0, 1, 1], [], []>} : vector<16x16xf32>, vector<16x8xf32>, vector<16x8xf32> -> vector<16x8xf32>
    %c0_34 = arith.constant 0 : index
    %c32 = arith.constant 32 : index
    %c0_35 = arith.constant 0 : index
    %54 = vector.load %arg2[%c0_34, %c32, %c0_35] : memref<2x160x128xf32, #tpu.memory_space<vmem>>, vector<1x8x32xf32>
    %55 = vector.shape_cast %54 : vector<1x8x32xf32> to vector<8x32xf32>
    %cst_36 = arith.constant dense<0.000000e+00> : vector<16x32xf32>
    %56 = tpu.matmul %53, %55, %cst_36 {dimension_numbers = #tpu.dot_dimension_numbers<[1], [0], [0], [1], [0, 0, 1, 1], [], []>} : vector<16x8xf32>, vector<8x32xf32>, vector<16x32xf32> -> vector<16x32xf32>
    %57 = arith.addf %33, %56 : vector<16x32xf32>
    %58 = vector.extract_strided_slice %32 {offsets = [0, 8], sizes = [16, 8], strides = [1, 1]} : vector<16x96xf32> to vector<16x8xf32>
    %cst_37 = arith.constant 0.353553385 : f32
    %59 = vector.broadcast %cst_37 : f32 to vector<16x8xf32>
    %60 = arith.mulf %58, %59 : vector<16x8xf32>
    %61 = vector.extract_strided_slice %32 {offsets = [0, 40], sizes = [16, 8], strides = [1, 1]} : vector<16x96xf32> to vector<16x8xf32>
    %62 = vector.extract_strided_slice %32 {offsets = [0, 72], sizes = [16, 8], strides = [1, 1]} : vector<16x96xf32> to vector<16x8xf32>
    %cst_38 = arith.constant dense<0.000000e+00> : vector<16x16xf32>
    %63 = tpu.matmul %60, %61, %cst_38 {dimension_numbers = #tpu.dot_dimension_numbers<[1], [1], [0], [0], [0, 0, 1, 0], [], []>} : vector<16x8xf32>, vector<16x8xf32>, vector<16x16xf32> -> vector<16x16xf32>
    %cst_39 = arith.constant -1.000000e+30 : f32
    %64 = vector.broadcast %cst_39 : f32 to vector<16x16xf32>
    %65 = arith.select %7, %63, %64 : vector<16x16xi1>, vector<16x16xf32>
    %cst_40 = arith.constant dense<0xFF800000> : vector<16xf32>
    %66 = vector.multi_reduction <maximumf>, %65, %cst_40 [1] : vector<16x16xf32> to vector<16xf32>
    %67 = vector.shape_cast %66 : vector<16xf32> to vector<16x1xf32>
    %68 = vector.broadcast %67 : vector<16x1xf32> to vector<16x16xf32>
    %69 = arith.subf %65, %68 : vector<16x16xf32>
    %70 = math.exp %69 : vector<16x16xf32>
    %cst_41 = arith.constant 0.000000e+00 : f32
    %71 = vector.broadcast %cst_41 : f32 to vector<16x16xf32>
    %72 = arith.select %7, %70, %71 : vector<16x16xi1>, vector<16x16xf32>
    %cst_42 = arith.constant dense<0.000000e+00> : vector<16xf32>
    %73 = vector.multi_reduction <add>, %72, %cst_42 [1] : vector<16x16xf32> to vector<16xf32>
    %74 = vector.shape_cast %73 : vector<16xf32> to vector<16x1xf32>
    %75 = vector.broadcast %74 : vector<16x1xf32> to vector<16x16xf32>
    %76 = arith.divf %72, %75 : vector<16x16xf32>
    %cst_43 = arith.constant dense<0.000000e+00> : vector<16x8xf32>
    %77 = tpu.matmul %76, %62, %cst_43 {dimension_numbers = #tpu.dot_dimension_numbers<[1], [0], [0], [1], [0, 0, 1, 1], [], []>} : vector<16x16xf32>, vector<16x8xf32>, vector<16x8xf32> -> vector<16x8xf32>
    %c0_44 = arith.constant 0 : index
    %c40 = arith.constant 40 : index
    %c0_45 = arith.constant 0 : index
    %78 = vector.load %arg2[%c0_44, %c40, %c0_45] : memref<2x160x128xf32, #tpu.memory_space<vmem>>, vector<1x8x32xf32>
    %79 = vector.shape_cast %78 : vector<1x8x32xf32> to vector<8x32xf32>
    %cst_46 = arith.constant dense<0.000000e+00> : vector<16x32xf32>
    %80 = tpu.matmul %77, %79, %cst_46 {dimension_numbers = #tpu.dot_dimension_numbers<[1], [0], [0], [1], [0, 0, 1, 1], [], []>} : vector<16x8xf32>, vector<8x32xf32>, vector<16x32xf32> -> vector<16x32xf32>
    %81 = arith.addf %57, %80 : vector<16x32xf32>
    %82 = vector.extract_strided_slice %32 {offsets = [0, 16], sizes = [16, 8], strides = [1, 1]} : vector<16x96xf32> to vector<16x8xf32>
    %cst_47 = arith.constant 0.353553385 : f32
    %83 = vector.broadcast %cst_47 : f32 to vector<16x8xf32>
    %84 = arith.mulf %82, %83 : vector<16x8xf32>
    %85 = vector.extract_strided_slice %32 {offsets = [0, 48], sizes = [16, 8], strides = [1, 1]} : vector<16x96xf32> to vector<16x8xf32>
    %86 = vector.extract_strided_slice %32 {offsets = [0, 80], sizes = [16, 8], strides = [1, 1]} : vector<16x96xf32> to vector<16x8xf32>
    %cst_48 = arith.constant dense<0.000000e+00> : vector<16x16xf32>
    %87 = tpu.matmul %84, %85, %cst_48 {dimension_numbers = #tpu.dot_dimension_numbers<[1], [1], [0], [0], [0, 0, 1, 0], [], []>} : vector<16x8xf32>, vector<16x8xf32>, vector<16x16xf32> -> vector<16x16xf32>
    %cst_49 = arith.constant -1.000000e+30 : f32
    %88 = vector.broadcast %cst_49 : f32 to vector<16x16xf32>
    %89 = arith.select %7, %87, %88 : vector<16x16xi1>, vector<16x16xf32>
    %cst_50 = arith.constant dense<0xFF800000> : vector<16xf32>
    %90 = vector.multi_reduction <maximumf>, %89, %cst_50 [1] : vector<16x16xf32> to vector<16xf32>
    %91 = vector.shape_cast %90 : vector<16xf32> to vector<16x1xf32>
    %92 = vector.broadcast %91 : vector<16x1xf32> to vector<16x16xf32>
    %93 = arith.subf %89, %92 : vector<16x16xf32>
    %94 = math.exp %93 : vector<16x16xf32>
    %cst_51 = arith.constant 0.000000e+00 : f32
    %95 = vector.broadcast %cst_51 : f32 to vector<16x16xf32>
    %96 = arith.select %7, %94, %95 : vector<16x16xi1>, vector<16x16xf32>
    %cst_52 = arith.constant dense<0.000000e+00> : vector<16xf32>
    %97 = vector.multi_reduction <add>, %96, %cst_52 [1] : vector<16x16xf32> to vector<16xf32>
    %98 = vector.shape_cast %97 : vector<16xf32> to vector<16x1xf32>
    %99 = vector.broadcast %98 : vector<16x1xf32> to vector<16x16xf32>
    %100 = arith.divf %96, %99 : vector<16x16xf32>
    %cst_53 = arith.constant dense<0.000000e+00> : vector<16x8xf32>
    %101 = tpu.matmul %100, %86, %cst_53 {dimension_numbers = #tpu.dot_dimension_numbers<[1], [0], [0], [1], [0, 0, 1, 1], [], []>} : vector<16x16xf32>, vector<16x8xf32>, vector<16x8xf32> -> vector<16x8xf32>
    %c0_54 = arith.constant 0 : index
    %c48 = arith.constant 48 : index
    %c0_55 = arith.constant 0 : index
    %102 = vector.load %arg2[%c0_54, %c48, %c0_55] : memref<2x160x128xf32, #tpu.memory_space<vmem>>, vector<1x8x32xf32>
    %103 = vector.shape_cast %102 : vector<1x8x32xf32> to vector<8x32xf32>
    %cst_56 = arith.constant dense<0.000000e+00> : vector<16x32xf32>
    %104 = tpu.matmul %101, %103, %cst_56 {dimension_numbers = #tpu.dot_dimension_numbers<[1], [0], [0], [1], [0, 0, 1, 1], [], []>} : vector<16x8xf32>, vector<8x32xf32>, vector<16x32xf32> -> vector<16x32xf32>
    %105 = arith.addf %81, %104 : vector<16x32xf32>
    %106 = vector.extract_strided_slice %32 {offsets = [0, 24], sizes = [16, 8], strides = [1, 1]} : vector<16x96xf32> to vector<16x8xf32>
    %cst_57 = arith.constant 0.353553385 : f32
    %107 = vector.broadcast %cst_57 : f32 to vector<16x8xf32>
    %108 = arith.mulf %106, %107 : vector<16x8xf32>
    %109 = vector.extract_strided_slice %32 {offsets = [0, 56], sizes = [16, 8], strides = [1, 1]} : vector<16x96xf32> to vector<16x8xf32>
    %110 = vector.extract_strided_slice %32 {offsets = [0, 88], sizes = [16, 8], strides = [1, 1]} : vector<16x96xf32> to vector<16x8xf32>
    %cst_58 = arith.constant dense<0.000000e+00> : vector<16x16xf32>
    %111 = tpu.matmul %108, %109, %cst_58 {dimension_numbers = #tpu.dot_dimension_numbers<[1], [1], [0], [0], [0, 0, 1, 0], [], []>} : vector<16x8xf32>, vector<16x8xf32>, vector<16x16xf32> -> vector<16x16xf32>
    %cst_59 = arith.constant -1.000000e+30 : f32
    %112 = vector.broadcast %cst_59 : f32 to vector<16x16xf32>
    %113 = arith.select %7, %111, %112 : vector<16x16xi1>, vector<16x16xf32>
    %cst_60 = arith.constant dense<0xFF800000> : vector<16xf32>
    %114 = vector.multi_reduction <maximumf>, %113, %cst_60 [1] : vector<16x16xf32> to vector<16xf32>
    %115 = vector.shape_cast %114 : vector<16xf32> to vector<16x1xf32>
    %116 = vector.broadcast %115 : vector<16x1xf32> to vector<16x16xf32>
    %117 = arith.subf %113, %116 : vector<16x16xf32>
    %118 = math.exp %117 : vector<16x16xf32>
    %cst_61 = arith.constant 0.000000e+00 : f32
    %119 = vector.broadcast %cst_61 : f32 to vector<16x16xf32>
    %120 = arith.select %7, %118, %119 : vector<16x16xi1>, vector<16x16xf32>
    %cst_62 = arith.constant dense<0.000000e+00> : vector<16xf32>
    %121 = vector.multi_reduction <add>, %120, %cst_62 [1] : vector<16x16xf32> to vector<16xf32>
    %122 = vector.shape_cast %121 : vector<16xf32> to vector<16x1xf32>
    %123 = vector.broadcast %122 : vector<16x1xf32> to vector<16x16xf32>
    %124 = arith.divf %120, %123 : vector<16x16xf32>
    %cst_63 = arith.constant dense<0.000000e+00> : vector<16x8xf32>
    %125 = tpu.matmul %124, %110, %cst_63 {dimension_numbers = #tpu.dot_dimension_numbers<[1], [0], [0], [1], [0, 0, 1, 1], [], []>} : vector<16x16xf32>, vector<16x8xf32>, vector<16x8xf32> -> vector<16x8xf32>
    %c0_64 = arith.constant 0 : index
    %c56 = arith.constant 56 : index
    %c0_65 = arith.constant 0 : index
    %126 = vector.load %arg2[%c0_64, %c56, %c0_65] : memref<2x160x128xf32, #tpu.memory_space<vmem>>, vector<1x8x32xf32>
    %127 = vector.shape_cast %126 : vector<1x8x32xf32> to vector<8x32xf32>
    %cst_66 = arith.constant dense<0.000000e+00> : vector<16x32xf32>
    %128 = tpu.matmul %125, %127, %cst_66 {dimension_numbers = #tpu.dot_dimension_numbers<[1], [0], [0], [1], [0, 0, 1, 1], [], []>} : vector<16x8xf32>, vector<8x32xf32>, vector<16x32xf32> -> vector<16x32xf32>
    %129 = arith.addf %105, %128 : vector<16x32xf32>
    %130 = vector.broadcast %17 : vector<1x32xf32> to vector<16x32xf32>
    %131 = arith.addf %129, %130 : vector<16x32xf32>
    %132 = arith.addf %0, %131 : vector<16x32xf32>
    %cst_67 = arith.constant dense<0.000000e+00> : vector<16xf32>
    %133 = vector.multi_reduction <add>, %132, %cst_67 [1] : vector<16x32xf32> to vector<16xf32>
    %134 = vector.shape_cast %133 : vector<16xf32> to vector<16x1xf32>
    %cst_68 = arith.constant 3.200000e+01 : f32
    %135 = vector.broadcast %cst_68 : f32 to vector<16x1xf32>
    %136 = arith.divf %134, %135 : vector<16x1xf32>
    %137 = vector.broadcast %136 : vector<16x1xf32> to vector<16x32xf32>
    %138 = arith.subf %132, %137 : vector<16x32xf32>
    %139 = arith.mulf %138, %138 : vector<16x32xf32>
    %cst_69 = arith.constant dense<0.000000e+00> : vector<16xf32>
    %140 = vector.multi_reduction <add>, %139, %cst_69 [1] : vector<16x32xf32> to vector<16xf32>
    %141 = vector.shape_cast %140 : vector<16xf32> to vector<16x1xf32>
    %cst_70 = arith.constant 3.200000e+01 : f32
    %142 = vector.broadcast %cst_70 : f32 to vector<16x1xf32>
    %143 = arith.divf %141, %142 : vector<16x1xf32>
    %cst_71 = arith.constant 9.99999974E-6 : f32
    %144 = vector.broadcast %cst_71 : f32 to vector<16x1xf32>
    %145 = arith.addf %143, %144 : vector<16x1xf32>
    %146 = math.rsqrt %145 : vector<16x1xf32>
    %147 = vector.broadcast %146 : vector<16x1xf32> to vector<16x32xf32>
    %148 = arith.mulf %138, %147 : vector<16x32xf32>
    %149 = vector.broadcast %23 : vector<1x32xf32> to vector<16x32xf32>
    %150 = arith.mulf %148, %149 : vector<16x32xf32>
    %151 = vector.broadcast %25 : vector<1x32xf32> to vector<16x32xf32>
    %152 = arith.addf %150, %151 : vector<16x32xf32>
    %cst_72 = arith.constant dense<0.000000e+00> : vector<16x64xf32>
    %153 = tpu.matmul %152, %11, %cst_72 {dimension_numbers = #tpu.dot_dimension_numbers<[1], [0], [0], [1], [0, 0, 1, 1], [], []>} : vector<16x32xf32>, vector<32x64xf32>, vector<16x64xf32> -> vector<16x64xf32>
    %154 = vector.broadcast %19 : vector<1x64xf32> to vector<16x64xf32>
    %155 = arith.addf %153, %154 : vector<16x64xf32>
    %cst_73 = arith.constant 0.000000e+00 : f32
    %156 = vector.broadcast %cst_73 : f32 to vector<16x64xf32>
    %157 = arith.maximumf %155, %156 : vector<16x64xf32>
    %cst_74 = arith.constant dense<0.000000e+00> : vector<16x32xf32>
    %158 = tpu.matmul %157, %13, %cst_74 {dimension_numbers = #tpu.dot_dimension_numbers<[1], [0], [0], [1], [0, 0, 1, 1], [], []>} : vector<16x64xf32>, vector<64x32xf32>, vector<16x32xf32> -> vector<16x32xf32>
    %159 = vector.broadcast %21 : vector<1x32xf32> to vector<16x32xf32>
    %160 = arith.addf %158, %159 : vector<16x32xf32>
    %161 = arith.addf %152, %160 : vector<16x32xf32>
    %cst_75 = arith.constant dense<0.000000e+00> : vector<16xf32>
    %162 = vector.multi_reduction <add>, %161, %cst_75 [1] : vector<16x32xf32> to vector<16xf32>
    %163 = vector.shape_cast %162 : vector<16xf32> to vector<16x1xf32>
    %cst_76 = arith.constant 3.200000e+01 : f32
    %164 = vector.broadcast %cst_76 : f32 to vector<16x1xf32>
    %165 = arith.divf %163, %164 : vector<16x1xf32>
    %166 = vector.broadcast %165 : vector<16x1xf32> to vector<16x32xf32>
    %167 = arith.subf %161, %166 : vector<16x32xf32>
    %168 = arith.mulf %167, %167 : vector<16x32xf32>
    %cst_77 = arith.constant dense<0.000000e+00> : vector<16xf32>
    %169 = vector.multi_reduction <add>, %168, %cst_77 [1] : vector<16x32xf32> to vector<16xf32>
    %170 = vector.shape_cast %169 : vector<16xf32> to vector<16x1xf32>
    %cst_78 = arith.constant 3.200000e+01 : f32
    %171 = vector.broadcast %cst_78 : f32 to vector<16x1xf32>
    %172 = arith.divf %170, %171 : vector<16x1xf32>
    %cst_79 = arith.constant 9.99999974E-6 : f32
    %173 = vector.broadcast %cst_79 : f32 to vector<16x1xf32>
    %174 = arith.addf %172, %173 : vector<16x1xf32>
    %175 = math.rsqrt %174 : vector<16x1xf32>
    %176 = vector.broadcast %175 : vector<16x1xf32> to vector<16x32xf32>
    %177 = arith.mulf %167, %176 : vector<16x32xf32>
    %178 = vector.broadcast %27 : vector<1x32xf32> to vector<16x32xf32>
    %179 = arith.mulf %177, %178 : vector<16x32xf32>
    %180 = vector.broadcast %29 : vector<1x32xf32> to vector<16x32xf32>
    %181 = arith.addf %179, %180 : vector<16x32xf32>
    %c1_80 = arith.constant 1 : index
    %c0_81 = arith.constant 0 : index
    %c0_82 = arith.constant 0 : index
    %182 = vector.load %arg2[%c1_80, %c0_81, %c0_82] : memref<2x160x128xf32, #tpu.memory_space<vmem>>, vector<1x32x96xf32>
    %183 = vector.shape_cast %182 : vector<1x32x96xf32> to vector<32x96xf32>
    %c1_83 = arith.constant 1 : index
    %c64_84 = arith.constant 64 : index
    %c0_85 = arith.constant 0 : index
    %184 = vector.load %arg2[%c1_83, %c64_84, %c0_85] : memref<2x160x128xf32, #tpu.memory_space<vmem>>, vector<1x32x64xf32>
    %185 = vector.shape_cast %184 : vector<1x32x64xf32> to vector<32x64xf32>
    %c1_86 = arith.constant 1 : index
    %c96_87 = arith.constant 96 : index
    %c0_88 = arith.constant 0 : index
    %186 = vector.load %arg2[%c1_86, %c96_87, %c0_88] : memref<2x160x128xf32, #tpu.memory_space<vmem>>, vector<1x64x32xf32>
    %187 = vector.shape_cast %186 : vector<1x64x32xf32> to vector<64x32xf32>
    %c1_89 = arith.constant 1 : index
    %c0_90 = arith.constant 0 : index
    %c0_91 = arith.constant 0 : index
    %188 = vector.load %arg3[%c1_89, %c0_90, %c0_91] : memref<3x8x128xf32, #tpu.memory_space<vmem>>, vector<1x1x96xf32>
    %189 = vector.shape_cast %188 : vector<1x1x96xf32> to vector<1x96xf32>
    %c1_92 = arith.constant 1 : index
    %c1_93 = arith.constant 1 : index
    %c0_94 = arith.constant 0 : index
    %190 = vector.load %arg3[%c1_92, %c1_93, %c0_94] : memref<3x8x128xf32, #tpu.memory_space<vmem>>, vector<1x1x32xf32>
    %191 = vector.shape_cast %190 : vector<1x1x32xf32> to vector<1x32xf32>
    %c1_95 = arith.constant 1 : index
    %c2_96 = arith.constant 2 : index
    %c0_97 = arith.constant 0 : index
    %192 = vector.load %arg3[%c1_95, %c2_96, %c0_97] : memref<3x8x128xf32, #tpu.memory_space<vmem>>, vector<1x1x64xf32>
    %193 = vector.shape_cast %192 : vector<1x1x64xf32> to vector<1x64xf32>
    %c1_98 = arith.constant 1 : index
    %c3_99 = arith.constant 3 : index
    %c0_100 = arith.constant 0 : index
    %194 = vector.load %arg3[%c1_98, %c3_99, %c0_100] : memref<3x8x128xf32, #tpu.memory_space<vmem>>, vector<1x1x32xf32>
    %195 = vector.shape_cast %194 : vector<1x1x32xf32> to vector<1x32xf32>
    %c1_101 = arith.constant 1 : index
    %c4_102 = arith.constant 4 : index
    %c0_103 = arith.constant 0 : index
    %196 = vector.load %arg3[%c1_101, %c4_102, %c0_103] : memref<3x8x128xf32, #tpu.memory_space<vmem>>, vector<1x1x32xf32>
    %197 = vector.shape_cast %196 : vector<1x1x32xf32> to vector<1x32xf32>
    %c1_104 = arith.constant 1 : index
    %c5_105 = arith.constant 5 : index
    %c0_106 = arith.constant 0 : index
    %198 = vector.load %arg3[%c1_104, %c5_105, %c0_106] : memref<3x8x128xf32, #tpu.memory_space<vmem>>, vector<1x1x32xf32>
    %199 = vector.shape_cast %198 : vector<1x1x32xf32> to vector<1x32xf32>
    %c1_107 = arith.constant 1 : index
    %c6_108 = arith.constant 6 : index
    %c0_109 = arith.constant 0 : index
    %200 = vector.load %arg3[%c1_107, %c6_108, %c0_109] : memref<3x8x128xf32, #tpu.memory_space<vmem>>, vector<1x1x32xf32>
    %201 = vector.shape_cast %200 : vector<1x1x32xf32> to vector<1x32xf32>
    %c1_110 = arith.constant 1 : index
    %c7_111 = arith.constant 7 : index
    %c0_112 = arith.constant 0 : index
    %202 = vector.load %arg3[%c1_110, %c7_111, %c0_112] : memref<3x8x128xf32, #tpu.memory_space<vmem>>, vector<1x1x32xf32>
    %203 = vector.shape_cast %202 : vector<1x1x32xf32> to vector<1x32xf32>
    %cst_113 = arith.constant dense<0.000000e+00> : vector<16x96xf32>
    %204 = tpu.matmul %181, %183, %cst_113 {dimension_numbers = #tpu.dot_dimension_numbers<[1], [0], [0], [1], [0, 0, 1, 1], [], []>} : vector<16x32xf32>, vector<32x96xf32>, vector<16x96xf32> -> vector<16x96xf32>
    %205 = vector.broadcast %189 : vector<1x96xf32> to vector<16x96xf32>
    %206 = arith.addf %204, %205 : vector<16x96xf32>
    %cst_114 = arith.constant 0.000000e+00 : f32
    %207 = vector.broadcast %cst_114 : f32 to vector<16x32xf32>
    %208 = vector.extract_strided_slice %206 {offsets = [0, 0], sizes = [16, 8], strides = [1, 1]} : vector<16x96xf32> to vector<16x8xf32>
    %cst_115 = arith.constant 0.353553385 : f32
    %209 = vector.broadcast %cst_115 : f32 to vector<16x8xf32>
    %210 = arith.mulf %208, %209 : vector<16x8xf32>
    %211 = vector.extract_strided_slice %206 {offsets = [0, 32], sizes = [16, 8], strides = [1, 1]} : vector<16x96xf32> to vector<16x8xf32>
    %212 = vector.extract_strided_slice %206 {offsets = [0, 64], sizes = [16, 8], strides = [1, 1]} : vector<16x96xf32> to vector<16x8xf32>
    %cst_116 = arith.constant dense<0.000000e+00> : vector<16x16xf32>
    %213 = tpu.matmul %210, %211, %cst_116 {dimension_numbers = #tpu.dot_dimension_numbers<[1], [1], [0], [0], [0, 0, 1, 0], [], []>} : vector<16x8xf32>, vector<16x8xf32>, vector<16x16xf32> -> vector<16x16xf32>
    %cst_117 = arith.constant -1.000000e+30 : f32
    %214 = vector.broadcast %cst_117 : f32 to vector<16x16xf32>
    %215 = arith.select %7, %213, %214 : vector<16x16xi1>, vector<16x16xf32>
    %cst_118 = arith.constant dense<0xFF800000> : vector<16xf32>
    %216 = vector.multi_reduction <maximumf>, %215, %cst_118 [1] : vector<16x16xf32> to vector<16xf32>
    %217 = vector.shape_cast %216 : vector<16xf32> to vector<16x1xf32>
    %218 = vector.broadcast %217 : vector<16x1xf32> to vector<16x16xf32>
    %219 = arith.subf %215, %218 : vector<16x16xf32>
    %220 = math.exp %219 : vector<16x16xf32>
    %cst_119 = arith.constant 0.000000e+00 : f32
    %221 = vector.broadcast %cst_119 : f32 to vector<16x16xf32>
    %222 = arith.select %7, %220, %221 : vector<16x16xi1>, vector<16x16xf32>
    %cst_120 = arith.constant dense<0.000000e+00> : vector<16xf32>
    %223 = vector.multi_reduction <add>, %222, %cst_120 [1] : vector<16x16xf32> to vector<16xf32>
    %224 = vector.shape_cast %223 : vector<16xf32> to vector<16x1xf32>
    %225 = vector.broadcast %224 : vector<16x1xf32> to vector<16x16xf32>
    %226 = arith.divf %222, %225 : vector<16x16xf32>
    %cst_121 = arith.constant dense<0.000000e+00> : vector<16x8xf32>
    %227 = tpu.matmul %226, %212, %cst_121 {dimension_numbers = #tpu.dot_dimension_numbers<[1], [0], [0], [1], [0, 0, 1, 1], [], []>} : vector<16x16xf32>, vector<16x8xf32>, vector<16x8xf32> -> vector<16x8xf32>
    %c1_122 = arith.constant 1 : index
    %c32_123 = arith.constant 32 : index
    %c0_124 = arith.constant 0 : index
    %228 = vector.load %arg2[%c1_122, %c32_123, %c0_124] : memref<2x160x128xf32, #tpu.memory_space<vmem>>, vector<1x8x32xf32>
    %229 = vector.shape_cast %228 : vector<1x8x32xf32> to vector<8x32xf32>
    %cst_125 = arith.constant dense<0.000000e+00> : vector<16x32xf32>
    %230 = tpu.matmul %227, %229, %cst_125 {dimension_numbers = #tpu.dot_dimension_numbers<[1], [0], [0], [1], [0, 0, 1, 1], [], []>} : vector<16x8xf32>, vector<8x32xf32>, vector<16x32xf32> -> vector<16x32xf32>
    %231 = arith.addf %207, %230 : vector<16x32xf32>
    %232 = vector.extract_strided_slice %206 {offsets = [0, 8], sizes = [16, 8], strides = [1, 1]} : vector<16x96xf32> to vector<16x8xf32>
    %cst_126 = arith.constant 0.353553385 : f32
    %233 = vector.broadcast %cst_126 : f32 to vector<16x8xf32>
    %234 = arith.mulf %232, %233 : vector<16x8xf32>
    %235 = vector.extract_strided_slice %206 {offsets = [0, 40], sizes = [16, 8], strides = [1, 1]} : vector<16x96xf32> to vector<16x8xf32>
    %236 = vector.extract_strided_slice %206 {offsets = [0, 72], sizes = [16, 8], strides = [1, 1]} : vector<16x96xf32> to vector<16x8xf32>
    %cst_127 = arith.constant dense<0.000000e+00> : vector<16x16xf32>
    %237 = tpu.matmul %234, %235, %cst_127 {dimension_numbers = #tpu.dot_dimension_numbers<[1], [1], [0], [0], [0, 0, 1, 0], [], []>} : vector<16x8xf32>, vector<16x8xf32>, vector<16x16xf32> -> vector<16x16xf32>
    %cst_128 = arith.constant -1.000000e+30 : f32
    %238 = vector.broadcast %cst_128 : f32 to vector<16x16xf32>
    %239 = arith.select %7, %237, %238 : vector<16x16xi1>, vector<16x16xf32>
    %cst_129 = arith.constant dense<0xFF800000> : vector<16xf32>
    %240 = vector.multi_reduction <maximumf>, %239, %cst_129 [1] : vector<16x16xf32> to vector<16xf32>
    %241 = vector.shape_cast %240 : vector<16xf32> to vector<16x1xf32>
    %242 = vector.broadcast %241 : vector<16x1xf32> to vector<16x16xf32>
    %243 = arith.subf %239, %242 : vector<16x16xf32>
    %244 = math.exp %243 : vector<16x16xf32>
    %cst_130 = arith.constant 0.000000e+00 : f32
    %245 = vector.broadcast %cst_130 : f32 to vector<16x16xf32>
    %246 = arith.select %7, %244, %245 : vector<16x16xi1>, vector<16x16xf32>
    %cst_131 = arith.constant dense<0.000000e+00> : vector<16xf32>
    %247 = vector.multi_reduction <add>, %246, %cst_131 [1] : vector<16x16xf32> to vector<16xf32>
    %248 = vector.shape_cast %247 : vector<16xf32> to vector<16x1xf32>
    %249 = vector.broadcast %248 : vector<16x1xf32> to vector<16x16xf32>
    %250 = arith.divf %246, %249 : vector<16x16xf32>
    %cst_132 = arith.constant dense<0.000000e+00> : vector<16x8xf32>
    %251 = tpu.matmul %250, %236, %cst_132 {dimension_numbers = #tpu.dot_dimension_numbers<[1], [0], [0], [1], [0, 0, 1, 1], [], []>} : vector<16x16xf32>, vector<16x8xf32>, vector<16x8xf32> -> vector<16x8xf32>
    %c1_133 = arith.constant 1 : index
    %c40_134 = arith.constant 40 : index
    %c0_135 = arith.constant 0 : index
    %252 = vector.load %arg2[%c1_133, %c40_134, %c0_135] : memref<2x160x128xf32, #tpu.memory_space<vmem>>, vector<1x8x32xf32>
    %253 = vector.shape_cast %252 : vector<1x8x32xf32> to vector<8x32xf32>
    %cst_136 = arith.constant dense<0.000000e+00> : vector<16x32xf32>
    %254 = tpu.matmul %251, %253, %cst_136 {dimension_numbers = #tpu.dot_dimension_numbers<[1], [0], [0], [1], [0, 0, 1, 1], [], []>} : vector<16x8xf32>, vector<8x32xf32>, vector<16x32xf32> -> vector<16x32xf32>
    %255 = arith.addf %231, %254 : vector<16x32xf32>
    %256 = vector.extract_strided_slice %206 {offsets = [0, 16], sizes = [16, 8], strides = [1, 1]} : vector<16x96xf32> to vector<16x8xf32>
    %cst_137 = arith.constant 0.353553385 : f32
    %257 = vector.broadcast %cst_137 : f32 to vector<16x8xf32>
    %258 = arith.mulf %256, %257 : vector<16x8xf32>
    %259 = vector.extract_strided_slice %206 {offsets = [0, 48], sizes = [16, 8], strides = [1, 1]} : vector<16x96xf32> to vector<16x8xf32>
    %260 = vector.extract_strided_slice %206 {offsets = [0, 80], sizes = [16, 8], strides = [1, 1]} : vector<16x96xf32> to vector<16x8xf32>
    %cst_138 = arith.constant dense<0.000000e+00> : vector<16x16xf32>
    %261 = tpu.matmul %258, %259, %cst_138 {dimension_numbers = #tpu.dot_dimension_numbers<[1], [1], [0], [0], [0, 0, 1, 0], [], []>} : vector<16x8xf32>, vector<16x8xf32>, vector<16x16xf32> -> vector<16x16xf32>
    %cst_139 = arith.constant -1.000000e+30 : f32
    %262 = vector.broadcast %cst_139 : f32 to vector<16x16xf32>
    %263 = arith.select %7, %261, %262 : vector<16x16xi1>, vector<16x16xf32>
    %cst_140 = arith.constant dense<0xFF800000> : vector<16xf32>
    %264 = vector.multi_reduction <maximumf>, %263, %cst_140 [1] : vector<16x16xf32> to vector<16xf32>
    %265 = vector.shape_cast %264 : vector<16xf32> to vector<16x1xf32>
    %266 = vector.broadcast %265 : vector<16x1xf32> to vector<16x16xf32>
    %267 = arith.subf %263, %266 : vector<16x16xf32>
    %268 = math.exp %267 : vector<16x16xf32>
    %cst_141 = arith.constant 0.000000e+00 : f32
    %269 = vector.broadcast %cst_141 : f32 to vector<16x16xf32>
    %270 = arith.select %7, %268, %269 : vector<16x16xi1>, vector<16x16xf32>
    %cst_142 = arith.constant dense<0.000000e+00> : vector<16xf32>
    %271 = vector.multi_reduction <add>, %270, %cst_142 [1] : vector<16x16xf32> to vector<16xf32>
    %272 = vector.shape_cast %271 : vector<16xf32> to vector<16x1xf32>
    %273 = vector.broadcast %272 : vector<16x1xf32> to vector<16x16xf32>
    %274 = arith.divf %270, %273 : vector<16x16xf32>
    %cst_143 = arith.constant dense<0.000000e+00> : vector<16x8xf32>
    %275 = tpu.matmul %274, %260, %cst_143 {dimension_numbers = #tpu.dot_dimension_numbers<[1], [0], [0], [1], [0, 0, 1, 1], [], []>} : vector<16x16xf32>, vector<16x8xf32>, vector<16x8xf32> -> vector<16x8xf32>
    %c1_144 = arith.constant 1 : index
    %c48_145 = arith.constant 48 : index
    %c0_146 = arith.constant 0 : index
    %276 = vector.load %arg2[%c1_144, %c48_145, %c0_146] : memref<2x160x128xf32, #tpu.memory_space<vmem>>, vector<1x8x32xf32>
    %277 = vector.shape_cast %276 : vector<1x8x32xf32> to vector<8x32xf32>
    %cst_147 = arith.constant dense<0.000000e+00> : vector<16x32xf32>
    %278 = tpu.matmul %275, %277, %cst_147 {dimension_numbers = #tpu.dot_dimension_numbers<[1], [0], [0], [1], [0, 0, 1, 1], [], []>} : vector<16x8xf32>, vector<8x32xf32>, vector<16x32xf32> -> vector<16x32xf32>
    %279 = arith.addf %255, %278 : vector<16x32xf32>
    %280 = vector.extract_strided_slice %206 {offsets = [0, 24], sizes = [16, 8], strides = [1, 1]} : vector<16x96xf32> to vector<16x8xf32>
    %cst_148 = arith.constant 0.353553385 : f32
    %281 = vector.broadcast %cst_148 : f32 to vector<16x8xf32>
    %282 = arith.mulf %280, %281 : vector<16x8xf32>
    %283 = vector.extract_strided_slice %206 {offsets = [0, 56], sizes = [16, 8], strides = [1, 1]} : vector<16x96xf32> to vector<16x8xf32>
    %284 = vector.extract_strided_slice %206 {offsets = [0, 88], sizes = [16, 8], strides = [1, 1]} : vector<16x96xf32> to vector<16x8xf32>
    %cst_149 = arith.constant dense<0.000000e+00> : vector<16x16xf32>
    %285 = tpu.matmul %282, %283, %cst_149 {dimension_numbers = #tpu.dot_dimension_numbers<[1], [1], [0], [0], [0, 0, 1, 0], [], []>} : vector<16x8xf32>, vector<16x8xf32>, vector<16x16xf32> -> vector<16x16xf32>
    %cst_150 = arith.constant -1.000000e+30 : f32
    %286 = vector.broadcast %cst_150 : f32 to vector<16x16xf32>
    %287 = arith.select %7, %285, %286 : vector<16x16xi1>, vector<16x16xf32>
    %cst_151 = arith.constant dense<0xFF800000> : vector<16xf32>
    %288 = vector.multi_reduction <maximumf>, %287, %cst_151 [1] : vector<16x16xf32> to vector<16xf32>
    %289 = vector.shape_cast %288 : vector<16xf32> to vector<16x1xf32>
    %290 = vector.broadcast %289 : vector<16x1xf32> to vector<16x16xf32>
    %291 = arith.subf %287, %290 : vector<16x16xf32>
    %292 = math.exp %291 : vector<16x16xf32>
    %cst_152 = arith.constant 0.000000e+00 : f32
    %293 = vector.broadcast %cst_152 : f32 to vector<16x16xf32>
    %294 = arith.select %7, %292, %293 : vector<16x16xi1>, vector<16x16xf32>
    %cst_153 = arith.constant dense<0.000000e+00> : vector<16xf32>
    %295 = vector.multi_reduction <add>, %294, %cst_153 [1] : vector<16x16xf32> to vector<16xf32>
    %296 = vector.shape_cast %295 : vector<16xf32> to vector<16x1xf32>
    %297 = vector.broadcast %296 : vector<16x1xf32> to vector<16x16xf32>
    %298 = arith.divf %294, %297 : vector<16x16xf32>
    %cst_154 = arith.constant dense<0.000000e+00> : vector<16x8xf32>
    %299 = tpu.matmul %298, %284, %cst_154 {dimension_numbers = #tpu.dot_dimension_numbers<[1], [0], [0], [1], [0, 0, 1, 1], [], []>} : vector<16x16xf32>, vector<16x8xf32>, vector<16x8xf32> -> vector<16x8xf32>
    %c1_155 = arith.constant 1 : index
    %c56_156 = arith.constant 56 : index
    %c0_157 = arith.constant 0 : index
    %300 = vector.load %arg2[%c1_155, %c56_156, %c0_157] : memref<2x160x128xf32, #tpu.memory_space<vmem>>, vector<1x8x32xf32>
    %301 = vector.shape_cast %300 : vector<1x8x32xf32> to vector<8x32xf32>
    %cst_158 = arith.constant dense<0.000000e+00> : vector<16x32xf32>
    %302 = tpu.matmul %299, %301, %cst_158 {dimension_numbers = #tpu.dot_dimension_numbers<[1], [0], [0], [1], [0, 0, 1, 1], [], []>} : vector<16x8xf32>, vector<8x32xf32>, vector<16x32xf32> -> vector<16x32xf32>
    %303 = arith.addf %279, %302 : vector<16x32xf32>
    %304 = vector.broadcast %191 : vector<1x32xf32> to vector<16x32xf32>
    %305 = arith.addf %303, %304 : vector<16x32xf32>
    %306 = arith.addf %181, %305 : vector<16x32xf32>
    %cst_159 = arith.constant dense<0.000000e+00> : vector<16xf32>
    %307 = vector.multi_reduction <add>, %306, %cst_159 [1] : vector<16x32xf32> to vector<16xf32>
    %308 = vector.shape_cast %307 : vector<16xf32> to vector<16x1xf32>
    %cst_160 = arith.constant 3.200000e+01 : f32
    %309 = vector.broadcast %cst_160 : f32 to vector<16x1xf32>
    %310 = arith.divf %308, %309 : vector<16x1xf32>
    %311 = vector.broadcast %310 : vector<16x1xf32> to vector<16x32xf32>
    %312 = arith.subf %306, %311 : vector<16x32xf32>
    %313 = arith.mulf %312, %312 : vector<16x32xf32>
    %cst_161 = arith.constant dense<0.000000e+00> : vector<16xf32>
    %314 = vector.multi_reduction <add>, %313, %cst_161 [1] : vector<16x32xf32> to vector<16xf32>
    %315 = vector.shape_cast %314 : vector<16xf32> to vector<16x1xf32>
    %cst_162 = arith.constant 3.200000e+01 : f32
    %316 = vector.broadcast %cst_162 : f32 to vector<16x1xf32>
    %317 = arith.divf %315, %316 : vector<16x1xf32>
    %cst_163 = arith.constant 9.99999974E-6 : f32
    %318 = vector.broadcast %cst_163 : f32 to vector<16x1xf32>
    %319 = arith.addf %317, %318 : vector<16x1xf32>
    %320 = math.rsqrt %319 : vector<16x1xf32>
    %321 = vector.broadcast %320 : vector<16x1xf32> to vector<16x32xf32>
    %322 = arith.mulf %312, %321 : vector<16x32xf32>
    %323 = vector.broadcast %197 : vector<1x32xf32> to vector<16x32xf32>
    %324 = arith.mulf %322, %323 : vector<16x32xf32>
    %325 = vector.broadcast %199 : vector<1x32xf32> to vector<16x32xf32>
    %326 = arith.addf %324, %325 : vector<16x32xf32>
    %cst_164 = arith.constant dense<0.000000e+00> : vector<16x64xf32>
    %327 = tpu.matmul %326, %185, %cst_164 {dimension_numbers = #tpu.dot_dimension_numbers<[1], [0], [0], [1], [0, 0, 1, 1], [], []>} : vector<16x32xf32>, vector<32x64xf32>, vector<16x64xf32> -> vector<16x64xf32>
    %328 = vector.broadcast %193 : vector<1x64xf32> to vector<16x64xf32>
    %329 = arith.addf %327, %328 : vector<16x64xf32>
    %cst_165 = arith.constant 0.000000e+00 : f32
    %330 = vector.broadcast %cst_165 : f32 to vector<16x64xf32>
    %331 = arith.maximumf %329, %330 : vector<16x64xf32>
    %cst_166 = arith.constant dense<0.000000e+00> : vector<16x32xf32>
    %332 = tpu.matmul %331, %187, %cst_166 {dimension_numbers = #tpu.dot_dimension_numbers<[1], [0], [0], [1], [0, 0, 1, 1], [], []>} : vector<16x64xf32>, vector<64x32xf32>, vector<16x32xf32> -> vector<16x32xf32>
    %333 = vector.broadcast %195 : vector<1x32xf32> to vector<16x32xf32>
    %334 = arith.addf %332, %333 : vector<16x32xf32>
    %335 = arith.addf %326, %334 : vector<16x32xf32>
    %cst_167 = arith.constant dense<0.000000e+00> : vector<16xf32>
    %336 = vector.multi_reduction <add>, %335, %cst_167 [1] : vector<16x32xf32> to vector<16xf32>
    %337 = vector.shape_cast %336 : vector<16xf32> to vector<16x1xf32>
    %cst_168 = arith.constant 3.200000e+01 : f32
    %338 = vector.broadcast %cst_168 : f32 to vector<16x1xf32>
    %339 = arith.divf %337, %338 : vector<16x1xf32>
    %340 = vector.broadcast %339 : vector<16x1xf32> to vector<16x32xf32>
    %341 = arith.subf %335, %340 : vector<16x32xf32>
    %342 = arith.mulf %341, %341 : vector<16x32xf32>
    %cst_169 = arith.constant dense<0.000000e+00> : vector<16xf32>
    %343 = vector.multi_reduction <add>, %342, %cst_169 [1] : vector<16x32xf32> to vector<16xf32>
    %344 = vector.shape_cast %343 : vector<16xf32> to vector<16x1xf32>
    %cst_170 = arith.constant 3.200000e+01 : f32
    %345 = vector.broadcast %cst_170 : f32 to vector<16x1xf32>
    %346 = arith.divf %344, %345 : vector<16x1xf32>
    %cst_171 = arith.constant 9.99999974E-6 : f32
    %347 = vector.broadcast %cst_171 : f32 to vector<16x1xf32>
    %348 = arith.addf %346, %347 : vector<16x1xf32>
    %349 = math.rsqrt %348 : vector<16x1xf32>
    %350 = vector.broadcast %349 : vector<16x1xf32> to vector<16x32xf32>
    %351 = arith.mulf %341, %350 : vector<16x32xf32>
    %352 = vector.broadcast %201 : vector<1x32xf32> to vector<16x32xf32>
    %353 = arith.mulf %351, %352 : vector<16x32xf32>
    %354 = vector.broadcast %203 : vector<1x32xf32> to vector<16x32xf32>
    %355 = arith.addf %353, %354 : vector<16x32xf32>
    %c2_172 = arith.constant 2 : index
    %c0_173 = arith.constant 0 : index
    %c0_174 = arith.constant 0 : index
    %356 = vector.load %arg3[%c2_172, %c0_173, %c0_174] : memref<3x8x128xf32, #tpu.memory_space<vmem>>, vector<1x1x32xf32>
    %357 = vector.shape_cast %356 : vector<1x1x32xf32> to vector<1x32xf32>
    %c2_175 = arith.constant 2 : index
    %c1_176 = arith.constant 1 : index
    %c0_177 = arith.constant 0 : index
    %358 = vector.load %arg3[%c2_175, %c1_176, %c0_177] : memref<3x8x128xf32, #tpu.memory_space<vmem>>, vector<1x1x32xf32>
    %359 = vector.shape_cast %358 : vector<1x1x32xf32> to vector<1x32xf32>
    %cst_178 = arith.constant dense<0.000000e+00> : vector<16xf32>
    %360 = vector.multi_reduction <add>, %355, %cst_178 [1] : vector<16x32xf32> to vector<16xf32>
    %361 = vector.shape_cast %360 : vector<16xf32> to vector<16x1xf32>
    %cst_179 = arith.constant 3.200000e+01 : f32
    %362 = vector.broadcast %cst_179 : f32 to vector<16x1xf32>
    %363 = arith.divf %361, %362 : vector<16x1xf32>
    %364 = vector.broadcast %363 : vector<16x1xf32> to vector<16x32xf32>
    %365 = arith.subf %355, %364 : vector<16x32xf32>
    %366 = arith.mulf %365, %365 : vector<16x32xf32>
    %cst_180 = arith.constant dense<0.000000e+00> : vector<16xf32>
    %367 = vector.multi_reduction <add>, %366, %cst_180 [1] : vector<16x32xf32> to vector<16xf32>
    %368 = vector.shape_cast %367 : vector<16xf32> to vector<16x1xf32>
    %cst_181 = arith.constant 3.200000e+01 : f32
    %369 = vector.broadcast %cst_181 : f32 to vector<16x1xf32>
    %370 = arith.divf %368, %369 : vector<16x1xf32>
    %cst_182 = arith.constant 9.99999974E-6 : f32
    %371 = vector.broadcast %cst_182 : f32 to vector<16x1xf32>
    %372 = arith.addf %370, %371 : vector<16x1xf32>
    %373 = math.rsqrt %372 : vector<16x1xf32>
    %374 = vector.broadcast %373 : vector<16x1xf32> to vector<16x32xf32>
    %375 = arith.mulf %365, %374 : vector<16x32xf32>
    %376 = vector.broadcast %357 : vector<1x32xf32> to vector<16x32xf32>
    %377 = arith.mulf %375, %376 : vector<16x32xf32>
    %378 = vector.broadcast %359 : vector<1x32xf32> to vector<16x32xf32>
    %379 = arith.addf %377, %378 : vector<16x32xf32>
    %c0_183 = arith.constant 0 : index
    %c0_184 = arith.constant 0 : index
    %380 = vector.load %arg4[%c0_183, %c0_184] : memref<16x32xf32, #tpu.memory_space<vmem>>, vector<16x32xf32>
    tpu.vector_store %arg4[%c0_183, %c0_184], %379 {strides = array<i32>} : memref<16x32xf32, #tpu.memory_space<vmem>>, vector<16x32xf32>,
    return
  }
  func.func @transform_0(%arg0: i32) -> (i32, i32) {
    %c0_i32 = arith.constant 0 : i32
    %c0_i32_0 = arith.constant 0 : i32
    %c0_i32_1 = arith.constant 0 : i32
    return %c0_i32, %c0_i32_0 : i32, i32
  }
  func.func @transform_1(%arg0: i32) -> (i32, i32, i32) {
    %c0_i32 = arith.constant 0 : i32
    %c0_i32_0 = arith.constant 0 : i32
    %c0_i32_1 = arith.constant 0 : i32
    %c0_i32_2 = arith.constant 0 : i32
    return %c0_i32, %c0_i32_0, %c0_i32_1 : i32, i32, i32
  }
  func.func @transform_2(%arg0: i32) -> (i32, i32, i32) {
    %c0_i32 = arith.constant 0 : i32
    %c0_i32_0 = arith.constant 0 : i32
    %c0_i32_1 = arith.constant 0 : i32
    %c0_i32_2 = arith.constant 0 : i32
    return %c0_i32, %c0_i32_0, %c0_i32_1 : i32, i32, i32
  }
  func.func @transform_3(%arg0: i32) -> (i32, i32) {
    %c0_i32 = arith.constant 0 : i32
    %c0_i32_0 = arith.constant 0 : i32
    %c0_i32_1 = arith.constant 0 : i32
    return %c0_i32, %c0_i32_0 : i32, i32
  }
}

</mosaic_0001>

<bundles_post_ra>
// kernel: transformer_encoder_return_attention.1
= control target key start
LH: loop header
LB: loop body
LE: loop exit
PB: predicated region body
PF: predicated region fallthrough
CT: control target
= control target key end

     0   :  { %8 = vsyncpa [#allocation3], 0  ;;  %s4236_s0 = inlined_call_operand.hbm [shape: f32[16,32], index: 0, kind: input, shape index: {}]   ;;  %s4237_s1 = inlined_call_operand.hbm [shape: f32[2,160,128], index: 1, kind: input, shape index: {}]   ;;  %s4238_s2 = inlined_call_operand.hbm [shape: f32[3,8,128], index: 2, kind: input, shape index: {}]   ;;  %s4239_s3 = inlined_call_operand.hbm [shape: f32[16,32], index: 3, kind: output, shape index: {}]  }
   0x1   :  { %9 = vsyncpa [#allocation6], 0 }
   0x2   :  { %10 = vsyncpa [#allocation4], 0  ;;  %s3817_s12 = smov [#allocation5]   ;;  %s3818_s14 = smov [#allocation2]  }
   0x3   :  { %s28_s13 = sshll.u32 %s3817_s12, 4  ;;  %s16_s15 = sshll.u32 %s3818_s14, 4  ;;  %s29_s13 = int_to_ptr.vmem [resolvable:$true] %s28_s13  ;;  %s17_s15 = int_to_ptr.vmem [resolvable:$true] %s16_s15 }
   0x4   :  { %s3739_s16 = scalar_lea.vmem %s29_s13, 5120  ;;  %p3744_p1 = scmp.lt.s32.totalorder %s29_s13, %s29_s13 }
   0x5   :  { %p3740_p0 = scmp.ne.s32.totalorder %s29_s13, %s3739_s16  ;;  %p3745_p2 = scmp.lt.s32.totalorder %s3739_s16, %s3739_s16 }
   0x7   :  { %p3746_p3 = por %p3745_p2, %p3744_p1 }
   0x9   :  { %p3747_p4 = pnand %p3746_p3, %p3740_p0 }
   0xb   :  { %3750 = shalt.err (!%p3747_p4)
}
   0xc   :  { %s3819_s17 = smov 128   ;;  %s3820_s18 = smov 8  }
   0xd   :  { %34 = dma.hbm_to_vmem [thread:$0]  %s4237_s1, 5120, %s29_s13, [#allocation6], %s3819_s17, %s3819_s17, %s3820_s18  }
   0xe   :  { %s3759_s21 = scalar_lea.vmem %s17_s15, 256  ;;  %p3764_p6 = scmp.lt.s32.totalorder %s17_s15, %s17_s15 }
   0xf   :  { %p3760_p5 = scmp.ne.s32.totalorder %s17_s15, %s3759_s21  ;;  %p3765_p7 = scmp.lt.s32.totalorder %s3759_s21, %s3759_s21 }
  0x11   :  { %p3766_p8 = por %p3765_p7, %p3764_p6 }
  0x13   :  { %p3767_p9 = pnand %p3766_p8, %p3760_p5 }
  0x15   :  { %3770 = shalt.err (!%p3767_p9)
}
  0x16   :  { %22 = dma.hbm_to_vmem [thread:$0]  %s4236_s0, 256, %s17_s15, [#allocation3], %s3819_s17, %s3819_s17, %s3820_s18  }
  0x17   :  { %s3821_s24 = smov [#allocation7]  }
  0x18   :  { %s40_s25 = sshll.u32 %s3821_s24, 4  ;;  %s41_s25 = int_to_ptr.vmem [resolvable:$true] %s40_s25 }
  0x19   :  { %s3779_s26 = scalar_lea.vmem %s41_s25, 384  ;;  %p3784_p11 = scmp.lt.s32.totalorder %s41_s25, %s41_s25 }
  0x1a   :  { %p3780_p10 = scmp.ne.s32.totalorder %s41_s25, %s3779_s26  ;;  %p3785_p12 = scmp.lt.s32.totalorder %s3779_s26, %s3779_s26 }
  0x1c   :  { %p3786_p13 = por %p3785_p12, %p3784_p11 }
  0x1e   :  { %p3787_p0 = pnand %p3786_p13, %p3780_p10 }
  0x20   :  { %3790 = shalt.err (!%p3787_p0)
}
  0x21   :  { %46 = dma.hbm_to_vmem [thread:$0]  %s4238_s2, 384, %s41_s25, [#allocation6], %s3819_s17, %s3819_s17, %s3820_s18  }
  0x22   :  { %3811 = dma.done.wait [#allocation3], 256  }
  0x23   :  { %3812 = vsyncadd [#allocation3], 4294967040 }
  0x24   :  { %3813 = dma.done.wait [#allocation6], 5504  }
  0x25   :  { %3814 = vsyncadd [#allocation6], 4294961792  ;;  %vm96_vm0 = vcmask 261120   ;;  %v71_v0 = vld [vmem:[#allocation5 + $0x18] sm:$0xff]  ;;  %v70_v1 = vld [vmem:[#allocation5 + $0x10] sm:$0xff]  ;;  %s3822_s0 = smov 88   ;;  %v58_v19 = vlaneseq }
  0x26   :  { %3396 = vmatprep.subr.mxu0 %v71_v0  ;;  %v3872_v2 = vld [vmem:[#allocation2] sm:$0xff]  ;;  %v69_v3 = vld [vmem:[#allocation5 + $0x8] sm:$0xff]  ;;  %v68_v4 = vld [vmem:[#allocation5] sm:$0xff]  ;;  %s3823_s2 = smov 96   ;;  %vm186_vm1 = vcmask 64512   ;;  %s3824_s28 = smov 120  }
  0x27   :  { %3397 = vmatpush3.msra.mxu0 %v71_v0  ;;  %3404 = vmatprep.mubr.msk.f32.mxu0 %vm96_vm0, %v3872_v2  ;;  %v3876_v5 = vld [vmem:[#allocation2 + $0x8] sm:$0xff]  ;;  %v3170_v6 = vld [vmem:[#allocation7] ss:$0 sm:$0xff]  ;;  %v59_v20 = vshrl.u32 %v58_v19, 7  ;;  %v62_v22 = vand.u32 127, %v58_v19  ;;  %vm274_vm3 = vcmask 130048  }
  0x28   :  { %3398 = vmatprep.subr.mxu0 %v70_v1  ;;  %s3825_s29 = smov 64   ;;  %s3826_s30 = smov 56   ;;  %vm1468_vm5 = vcmask 523264  }
  0x29   :  { %3399 = vmatpush3.msra.mxu0 %v70_v1  ;;  %v60_v21 = vadd.s32 8, %v59_v20  ;;  %v65_v24 = vand.u32 1, %v62_v22  ;;  %v63_v25 = vand.u32 1, %v59_v20  ;;  %s3827_s4 = smov 80   ;;  %s3828_s5 = smov 112   ;;  %v591_v20 = vld [vmem:[#allocation5 + $0x28] sm:$0xff] }
  0x2a   :  { %3400 = vmatprep.subr.mxu0 %v69_v3  ;;  %s3829_s6 = smov 72   ;;  %s3830_s7 = smov 104  }
  0x2b   :  { %3401 = vmatpush3.msra.mxu0 %v69_v3  ;;  %v64_v23 = vand.u32 1, %v60_v21  ;;  %vm3920_vm4 = vcmp.eq.s32.totalorder %v63_v25, %v65_v24  ;;  %v386_v21 = vld [vmem:[#allocation5 + $0x20] sm:$0xff]  ;;  %s3831_s8 = smov 48   ;;  %s3832_s9 = smov 40  }
  0x2c   :  { %3402 = vmatprep.subr.mxu0 %v68_v4  ;;  %s3833_s10 = smov [#allocation8]  }
  0x2d   :  { %3403 = vmatpush3.msra.mxu0 %v68_v4  ;;  %vm3916_vm2 = vcmp.eq.s32.totalorder %v64_v23, %v65_v24  ;;  %s3157_s11 = sshll.u32 %s3833_s10, 4  ;;  %s3158_s11 = int_to_ptr.vmem [resolvable:$true] %s3157_s11 }
  0x2e   :  { %3405 = vmatmul.mubr.msk.f32.vlgmr.msra.gmra.mxu0 %vm96_vm0, %v3876_v5  ;;  %s3791_s12 = scalar_lea.vmem %s3158_s11, 256  ;;  %p3796_p2 = scmp.lt.s32.totalorder %s3158_s11, %s3158_s11 }
  0x2f   :  { %p3792_p1 = scmp.ne.s32.totalorder %s3158_s11, %s3791_s12  ;;  %p3797_p3 = scmp.lt.s32.totalorder %s3791_s12, %s3791_s12 }
  0x31   :  { %p3798_p4 = por %p3797_p3, %p3796_p2 }
  0x33   :  { %p3799_p5 = pnand %p3798_p4, %p3792_p1 }
  0xee   :  { %v3406_v7 = vpop.f32.mrf.mxu0 }
  0xef   :  { %v3880_v8 = vadd.f32 %v3406_v7, %v3170_v6 }
  0xf0   :  { %v169_v9 = vpop.f32.mrf.mxu0 }
  0xf1   :  { %v3882_v10 = vadd.f32 %v3170_v6, %v169_v9  ;;  %393 = vrot.lane.b32.xlu1 %v3880_v8, %s3822_s0  ;;  %184 = vrot.lane.b32.xlu0 %v3880_v8, %s3823_s2  ;;  %v3898_v12 = vmul.f32 0.35355338, %v3880_v8 }
  0xf3   :  { %v3889_v11 = vmul.f32 0.35355338, %v3882_v10 }
  0xf5   :  { %391 = vrot.lane.b32.xlu1 %v3882_v10, %s3822_s0  ;;  %182 = vrot.lane.b32.xlu0 %v3882_v10, %s3823_s2 }
  0xf6   :  { %3411 = vmatprep.mubr.msk.f32.mxu1 %vm186_vm1, %v3889_v11 }
  0xf9   :  { %389 = vrot.lane.b32.xlu1 %v3898_v12, %s3824_s28  ;;  %387 = vrot.lane.b32.xlu0 %v3889_v11, %s3824_s28 }
 0x163   :  { %v185_v13 = vpop.permute.xlu0 %184  ;;  %v394_v14 = vpop.permute.xlu1 %393 }
 0x164   :  { %3407 = vmatprep.subr.msk.mxu1 %vm186_vm1, %v185_v13 }
 0x165   :  { %3408 = vmatpush3.xpose.msk.msra.mxu1 %vm186_vm1, %v185_v13 }
 0x167   :  { %v183_v15 = vpop.permute.xlu0 %182  ;;  %v392_v17 = vpop.permute.xlu1 %391 }
 0x168   :  { %3409 = vmatprep.subr.msk.mxu1 %vm186_vm1, %v183_v15 }
 0x169   :  { %3410 = vmatpush3.xpose.msk.msra.mxu1 %vm186_vm1, %v183_v15 }
 0x16a   :  { %3421 = vmatprep.subr.msk.mxu1 %vm186_vm1, %v394_v14 }
 0x16b   :  { %v388_v16 = vpop.permute.xlu0 %387  ;;  %v390_v18 = vpop.permute.xlu1 %389 }
 0x16c   :  { %3412 = vmatmul.mubr.msk.f32.vlgmr.msra.gmra.mxu1 %vm186_vm1, %v3898_v12 }
 0x16d   :  { %3422 = vmatpush3.xpose.msk.msra.mxu1 %vm186_vm1, %v394_v14  ;;  %3425 = vmatprep.mubr.msk.f32.mxu1 %vm186_vm1, %v388_v16 }
 0x16e   :  { %3423 = vmatprep.subr.msk.mxu1 %vm186_vm1, %v392_v17 }
 0x171   :  { %3424 = vmatpush3.xpose.msk.msra.mxu1 %vm186_vm1, %v392_v17 }
 0x174   :  { %3426 = vmatmul.mubr.msk.f32.vlgmr.msra.gmra.mxu1 %vm186_vm1, %v390_v18 }
 0x22c   :  { %v3413_v27 = vpop.f32.mrf.mxu1 }
 0x22d   :  { %v273_v29 = vsel %vm3916_vm2, %v3413_v27, -1e+30 }
 0x22e   :  { %v263_v30 = vpop.f32.mrf.mxu1  ;;  %v278_v31 = vsel %vm274_vm3, %v273_v29, -inf }
 0x22f   :  { %v272_v32 = vsel %vm3920_vm4, %v263_v30, -1e+30  ;;  %279 = vmax.xlane.f32.xlu1 %v278_v31 }
 0x230   :  { %v275_v33 = vsel %vm274_vm3, %v272_v32, -inf }
 0x231   :  { %276 = vmax.xlane.f32.xlu0 %v275_v33 }
 0x234   :  { %v3427_v34 = vpop.f32.mrf.mxu1 }
 0x235   :  { %v479_v38 = vsel %vm3916_vm2, %v3427_v34, -1e+30 }
 0x236   :  { %v469_v35 = vpop.f32.mrf.mxu1  ;;  %v483_v39 = vsel %vm274_vm3, %v479_v38, -inf }
 0x237   :  { %v478_v36 = vsel %vm3920_vm4, %v469_v35, -1e+30 }
 0x238   :  { %v480_v37 = vsel %vm274_vm3, %v478_v36, -inf }
 0x239   :  { %481 = vmax.xlane.f32.xlu0 %v480_v37 }
 0x23d   :  { %484 = vmax.xlane.f32.xlu0 %v483_v39 }
 0x240   :  { %301 = vrot.lane.b32.xlu1 %v3880_v8, %s3825_s29 }
 0x2b8   :  { %v280_v40 = vpop.xlane.xlu1 %279 }
 0x2b9   :  { %v282_v41 = vsub.f32 %v273_v29, %v280_v40 }
 0x2ba   :  { %v277_v42 = vpop.xlane.xlu0 %276 }
 0x2bb   :  { %v285_v43 = vmul.f32 1.442695, %v282_v41  ;;  %v281_v44 = vsub.f32 %v272_v32, %v277_v42 }
 0x2bc   :  { %v302_v45 = vpop.permute.xlu1 %301 }
 0x2bd   :  { %3647 = vpow2.f32 %v285_v43  ;;  %v283_v46 = vmul.f32 1.442695, %v281_v44  ;;  %3414 = vmatprep.subr.mxu0 %v302_v45 }
 0x2be   :  { %3415 = vmatpush3.msra.mxu0 %v302_v45 }
 0x2bf   :  { %3649 = vpow2.f32 %v283_v46 }
 0x2c2   :  { %v482_v47 = vpop.xlane.xlu0 %481 }
 0x2c3   :  { %v486_v60 = vsub.f32 %v478_v36, %v482_v47 }
 0x2c5   :  { %v488_v61 = vmul.f32 1.442695, %v486_v60 }
 0x2c6   :  { %v485_v48 = vpop.xlane.xlu0 %484 }
 0x2c7   :  { %v487_v49 = vsub.f32 %v479_v38, %v485_v48 }
 0x2c9   :  { %v490_v50 = vmul.f32 1.442695, %v487_v49 }
 0x2ca   :  { %v3648_v51 = vpop.eup %3647 }
 0x2cb   :  { %3651 = vpow2.f32 %v490_v50  ;;  %v288_v52 = vsel %vm3916_vm2, %v3648_v51, 0.0 }
 0x2cc   :  { %v3650_v53 = vpop.eup %3649  ;;  %v292_v54 = vsel %vm274_vm3, %v288_v52, 0.0  ;;  %3653 = vpow2.f32 %v488_v61 }
 0x2cd   :  { %293 = vadd.xlane.f32.xlu0 %v292_v54  ;;  %v287_v55 = vsel %vm3920_vm4, %v3650_v53, 0.0 }
 0x2ce   :  { %v289_v56 = vsel %vm274_vm3, %v287_v55, 0.0 }
 0x2cf   :  { %290 = vadd.xlane.f32.xlu1 %v289_v56 }
 0x2d8   :  { %v3652_v57 = vpop.eup %3651 }
 0x2d9   :  { %v493_v58 = vsel %vm3916_vm2, %v3652_v57, 0.0  ;;  %v3654_v62 = vpop.eup %3653 }
 0x2da   :  { %v497_v59 = vsel %vm274_vm3, %v493_v58, 0.0  ;;  %v492_v63 = vsel %vm3920_vm4, %v3654_v62, 0.0 }
 0x2db   :  { %498 = vadd.xlane.f32.xlu0 %v497_v59  ;;  %v494_v0 = vsel %vm274_vm3, %v492_v63, 0.0 }
 0x2e0   :  { %506 = vrot.lane.b32.xlu1 %v3880_v8, %s3826_s30 }
 0x2f1   :  { %299 = vrot.lane.b32.xlu0 %v3882_v10, %s3825_s29 }
 0x2f5   :  { %760 = vrot.lane.b32.xlu0 %v3880_v8, %s3827_s4 }
 0x2f9   :  { %754 = vrot.lane.b32.xlu0 %v3889_v11, %s3828_s5 }
 0x2fd   :  { %1048 = vrot.lane.b32.xlu0 %v3880_v8, %s3829_s6 }
 0x301   :  { %1042 = vrot.lane.b32.xlu0 %v3889_v11, %s3830_s7 }
 0x304   :  { %495 = vadd.xlane.f32.xlu1 %v494_v0 }
 0x315   :  { %504 = vrot.lane.b32.xlu1 %v3882_v10, %s3826_s30 }
 0x319   :  { %758 = vrot.lane.b32.xlu1 %v3882_v10, %s3827_s4 }
 0x31d   :  { %756 = vrot.lane.b32.xlu1 %v3898_v12, %s3828_s5 }
 0x321   :  { %1046 = vrot.lane.b32.xlu1 %v3882_v10, %s3829_s6 }
 0x325   :  { %1044 = vrot.lane.b32.xlu1 %v3898_v12, %s3830_s7 }
 0x356   :  { %v294_v1 = vpop.xlane.xlu0 %293 }
 0x357   :  { %3655 = vrcp.f32 %v294_v1 }
 0x358   :  { %v291_v3 = vpop.xlane.xlu1 %290 }
 0x359   :  { %3657 = vrcp.f32 %v291_v3 }
 0x35c   :  { %v507_v14 = vpop.permute.xlu1 %506 }
 0x364   :  { %v499_v4 = vpop.xlane.xlu0 %498  ;;  %v3656_v6 = vpop.eup %3655 }
 0x365   :  { %v298_v13 = vmul.f32 %v3656_v6, %v288_v52  ;;  %3659 = vrcp.f32 %v499_v4 }
 0x366   :  { %v3658_v7 = vpop.eup %3657 }
 0x367   :  { %v296_v9 = vmul.f32 %v3658_v7, %v287_v55 }
 0x368   :  { %v300_v11 = vpop.permute.xlu0 %299 }
 0x369   :  { %3416 = vmatprep.subr.mxu0 %v300_v11  ;;  %3418 = vmatprep.mubr.msk.f32.mxu0 %vm274_vm3, %v296_v9 }
 0x36a   :  { %3417 = vmatpush3.msra.mxu0 %v300_v11 }
 0x36b   :  { %3419 = vmatmul.mubr.msk.f32.vlgmr.msra.gmra.mxu0 %vm274_vm3, %v298_v13  ;;  %3428 = vmatprep.subr.mxu0 %v507_v14 }
 0x36c   :  { %3429 = vmatpush3.msra.mxu0 %v507_v14  ;;  %v761_v23 = vpop.permute.xlu0 %760 }
 0x370   :  { %v755_v29 = vpop.permute.xlu0 %754 }
 0x372   :  { %v3660_v16 = vpop.eup %3659 }
 0x373   :  { %v503_v19 = vmul.f32 %v3660_v16, %v493_v58  ;;  %v958_v16 = vld [vmem:[#allocation5 + $0x30] sm:$0xff] }
 0x374   :  { %v1049_v31 = vpop.permute.xlu0 %1048 }
 0x378   :  { %v1043_v33 = vpop.permute.xlu0 %1042 }
 0x38d   :  { %v496_v12 = vpop.xlane.xlu1 %495 }
 0x38e   :  { %3661 = vrcp.f32 %v496_v12 }
 0x391   :  { %v505_v15 = vpop.permute.xlu1 %504 }
 0x392   :  { %3430 = vmatprep.subr.mxu0 %v505_v15 }
 0x393   :  { %3431 = vmatpush3.msra.mxu0 %v505_v15 }
 0x394   :  { %3435 = vmatprep.subr.mxu0 %v591_v20 }
 0x395   :  { %v759_v30 = vpop.permute.xlu1 %758 }
 0x399   :  { %v757_v32 = vpop.permute.xlu1 %756 }
 0x39b   :  { %v3662_v17 = vpop.eup %3661 }
 0x39c   :  { %v501_v18 = vmul.f32 %v3662_v17, %v492_v63 }
 0x39d   :  { %v1047_v34 = vpop.permute.xlu1 %1046 }
 0x39e   :  { %3432 = vmatprep.mubr.msk.f32.mxu0 %vm274_vm3, %v501_v18 }
 0x39f   :  { %3433 = vmatmul.mubr.msk.f32.vlgmr.msra.gmra.mxu0 %vm274_vm3, %v503_v19 }
 0x3a0   :  { %3436 = vmatpush3.msra.mxu0 %v591_v20 }
 0x3a1   :  { %3440 = vmatprep.subr.mxu0 %v386_v21  ;;  %v1045_v35 = vpop.permute.xlu1 %1044 }
 0x42b   :  { %v3420_v22 = vpop.f32.mrf.mxu0 }
 0x42d   :  { %v377_v24 = vpop.f32.mrf.mxu0 }
 0x45f   :  { %v3434_v25 = vpop.f32.mrf.mxu0 }
 0x461   :  { %v582_v27 = vpop.f32.mrf.mxu0 }
 0x462   :  { %3437 = vmatprep.mubr.msk.f32.mxu0 %vm186_vm1, %v582_v27 }
 0x463   :  { %3438 = vmatmul.mubr.msk.f32.vlgmr.msra.gmra.mxu0 %vm186_vm1, %v3434_v25 }
 0x464   :  { %3441 = vmatpush3.msra.mxu0 %v386_v21  ;;  %3442 = vmatprep.mubr.msk.f32.mxu0 %vm186_vm1, %v377_v24 }
 0x465   :  { %3445 = vmatprep.subr.msk.mxu0 %vm186_vm1, %v761_v23 }
 0x467   :  { %3443 = vmatmul.mubr.msk.f32.vlgmr.msra.gmra.mxu0 %vm186_vm1, %v3420_v22 }
 0x468   :  { %3446 = vmatpush3.xpose.msk.msra.mxu0 %vm186_vm1, %v761_v23  ;;  %3449 = vmatprep.mubr.msk.f32.mxu0 %vm186_vm1, %v755_v29 }
 0x469   :  { %3447 = vmatprep.subr.msk.mxu0 %vm186_vm1, %v759_v30 }
 0x46c   :  { %3448 = vmatpush3.xpose.msk.msra.mxu0 %vm186_vm1, %v759_v30 }
 0x46d   :  { %3464 = vmatprep.subr.msk.mxu0 %vm186_vm1, %v1049_v31 }
 0x46f   :  { %3450 = vmatmul.mubr.msk.f32.vlgmr.msra.gmra.mxu0 %vm186_vm1, %v757_v32 }
 0x470   :  { %3465 = vmatpush3.xpose.msk.msra.mxu0 %vm186_vm1, %v1049_v31  ;;  %3468 = vmatprep.mubr.msk.f32.mxu0 %vm186_vm1, %v1043_v33 }
 0x471   :  { %3466 = vmatprep.subr.msk.mxu0 %vm186_vm1, %v1047_v34 }
 0x474   :  { %3467 = vmatpush3.xpose.msk.msra.mxu0 %vm186_vm1, %v1047_v34 }
 0x477   :  { %3469 = vmatmul.mubr.msk.f32.vlgmr.msra.gmra.mxu0 %vm186_vm1, %v1045_v35 }
 0x523   :  { %v3439_v36 = vpop.f32.mrf.mxu0 }
 0x525   :  { %v664_v37 = vpop.f32.mrf.mxu0 }
 0x527   :  { %v3444_v38 = vpop.f32.mrf.mxu0 }
 0x528   :  { %v3992_v39 = vadd.f32 %v3444_v38, %v3439_v36 }
 0x529   :  { %v745_v40 = vpop.f32.mrf.mxu0 }
 0x52a   :  { %v3994_v41 = vadd.f32 %v745_v40, %v664_v37 }
 0x52f   :  { %v3451_v42 = vpop.f32.mrf.mxu0 }
 0x530   :  { %v846_v43 = vsel %vm3916_vm2, %v3451_v42, -1e+30 }
 0x531   :  { %v836_v44 = vpop.f32.mrf.mxu0  ;;  %v850_v45 = vsel %vm274_vm3, %v846_v43, -inf }
 0x532   :  { %v845_v46 = vsel %vm3920_vm4, %v836_v44, -1e+30  ;;  %851 = vmax.xlane.f32.xlu1 %v850_v45 }
 0x533   :  { %v847_v47 = vsel %vm274_vm3, %v845_v46, -inf }
 0x534   :  { %848 = vmax.xlane.f32.xlu0 %v847_v47 }
 0x537   :  { %v3470_v48 = vpop.f32.mrf.mxu0 }
 0x538   :  { %v1134_v11 = vsel %vm3916_vm2, %v3470_v48, -1e+30 }
 0x539   :  { %v1124_v49 = vpop.f32.mrf.mxu0  ;;  %v1138_v13 = vsel %vm274_vm3, %v1134_v11, -inf }
 0x53a   :  { %v1133_v50 = vsel %vm3920_vm4, %v1124_v49, -1e+30 }
 0x53b   :  { %v1135_v51 = vsel %vm274_vm3, %v1133_v50, -inf }
 0x543   :  { %873 = vrot.lane.b32.xlu1 %v3880_v8, %s3831_s8 }
 0x567   :  { %1136 = vmax.xlane.f32.xlu1 %v1135_v51 }
 0x5bb   :  { %v852_v52 = vpop.xlane.xlu1 %851 }
 0x5bc   :  { %v854_v53 = vsub.f32 %v846_v43, %v852_v52 }
 0x5bd   :  { %v849_v54 = vpop.xlane.xlu0 %848 }
 0x5be   :  { %v857_v55 = vmul.f32 1.442695, %v854_v53  ;;  %v853_v56 = vsub.f32 %v845_v46, %v849_v54  ;;  %v3205_v46 = vld [vmem:[#allocation7 + $0x1] ss:$0 sm:$0xff] }
 0x5bf   :  { %v874_v57 = vpop.permute.xlu1 %873 }
 0x5c0   :  { %3663 = vpow2.f32 %v857_v55  ;;  %v855_v58 = vmul.f32 1.442695, %v853_v56  ;;  %3452 = vmatprep.subr.mxu1 %v874_v57 }
 0x5c1   :  { %3453 = vmatpush3.msra.mxu1 %v874_v57 }
 0x5c2   :  { %3665 = vpow2.f32 %v855_v58 }
 0x5cd   :  { %v3664_v59 = vpop.eup %3663 }
 0x5ce   :  { %v860_v60 = vsel %vm3916_vm2, %v3664_v59, 0.0 }
 0x5cf   :  { %v3666_v61 = vpop.eup %3665  ;;  %v864_v62 = vsel %vm274_vm3, %v860_v60, 0.0 }
 0x5d0   :  { %865 = vadd.xlane.f32.xlu0 %v864_v62  ;;  %v859_v63 = vsel %vm3920_vm4, %v3666_v61, 0.0 }
 0x5d1   :  { %v861_v0 = vsel %vm274_vm3, %v859_v63, 0.0 }
 0x5d4   :  { %862 = vadd.xlane.f32.xlu0 %v861_v0  ;;  %v75_v0 = vld [vmem:[#allocation5 + $0x58] sm:$0xff] }
 0x5d5   :  { %3483 = vmatprep.subr.mxu0 %v75_v0 }
 0x5d6   :  { %3484 = vmatpush3.msra.mxu0 %v75_v0 }
 0x5ea   :  { %871 = vrot.lane.b32.xlu0 %v3882_v10, %s3831_s8 }
 0x5f0   :  { %v1137_v1 = vpop.xlane.xlu1 %1136 }
 0x5f1   :  { %v1141_v3 = vsub.f32 %v1133_v50, %v1137_v1  ;;  %v73_v1 = vld [vmem:[#allocation5 + $0x48] sm:$0xff] }
 0x5f3   :  { %v1143_v4 = vmul.f32 1.442695, %v1141_v3  ;;  %v72_v3 = vld [vmem:[#allocation5 + $0x40] sm:$0xff] }
 0x5f5   :  { %3667 = vpow2.f32 %v1143_v4  ;;  %v83_v4 = vld [vmem:[#allocation5 + $0x98] sm:$0xff] }
 0x602   :  { %v3668_v6 = vpop.eup %3667 }
 0x603   :  { %v1147_v7 = vsel %vm3920_vm4, %v3668_v6, 0.0  ;;  %v82_v6 = vld [vmem:[#allocation5 + $0x90] sm:$0xff] }
 0x604   :  { %v1149_v9 = vsel %vm274_vm3, %v1147_v7, 0.0 }
 0x605   :  { %1150 = vadd.xlane.f32.xlu1 %v1149_v9  ;;  %v80_v9 = vld [vmem:[#allocation5 + $0x80] sm:$0xff] }
 0x609   :  { %1139 = vmax.xlane.f32.xlu0 %v1138_v13 }
 0x616   :  { %1161 = vrot.lane.b32.xlu1 %v3880_v8, %s3832_s9 }
 0x659   :  { %v866_v14 = vpop.xlane.xlu0 %865 }
 0x65a   :  { %3669 = vrcp.f32 %v866_v14 }
 0x65d   :  { %v863_v12 = vpop.xlane.xlu0 %862 }
 0x65e   :  { %3671 = vrcp.f32 %v863_v12 }
 0x661   :  { %v872_v15 = vpop.permute.xlu0 %871 }
 0x662   :  { %3454 = vmatprep.subr.mxu1 %v872_v15 }
 0x663   :  { %3455 = vmatpush3.msra.mxu1 %v872_v15 }
 0x664   :  { %3459 = vmatprep.subr.mxu1 %v958_v16 }
 0x667   :  { %v3670_v17 = vpop.eup %3669 }
 0x668   :  { %v870_v20 = vmul.f32 %v3670_v17, %v860_v60 }
 0x66b   :  { %v3672_v18 = vpop.eup %3671 }
 0x66c   :  { %v868_v19 = vmul.f32 %v3672_v18, %v859_v63  ;;  %v3206_v18 = vld [vmem:[#allocation7 + $0x4] ss:$0 sm:$0xff] }
 0x66e   :  { %3456 = vmatprep.mubr.msk.f32.mxu1 %vm274_vm3, %v868_v19 }
 0x66f   :  { %3457 = vmatmul.mubr.msk.f32.vlgmr.msra.gmra.mxu1 %vm274_vm3, %v870_v20 }
 0x670   :  { %3460 = vmatpush3.msra.mxu1 %v958_v16 }
 0x68e   :  { %v1151_v21 = vpop.xlane.xlu1 %1150 }
 0x692   :  { %v1162_v8 = vpop.permute.xlu1 %1161  ;;  %v1140_v22 = vpop.xlane.xlu0 %1139 }
 0x693   :  { %v1142_v23 = vsub.f32 %v1134_v11, %v1140_v22  ;;  %3471 = vmatprep.subr.mxu1 %v1162_v8  ;;  %v3207_v22 = vld [vmem:[#allocation7 + $0x5] ss:$0 sm:$0xff] }
 0x695   :  { %v1145_v24 = vmul.f32 1.442695, %v1142_v23 }
 0x697   :  { %3673 = vpow2.f32 %v1145_v24 }
 0x698   :  { %3675 = vrcp.f32 %v1151_v21 }
 0x6a4   :  { %v3674_v25 = vpop.eup %3673 }
 0x6a5   :  { %v1148_v27 = vsel %vm3916_vm2, %v3674_v25, 0.0  ;;  %v3676_v30 = vpop.eup %3675 }
 0x6a6   :  { %v1152_v29 = vsel %vm274_vm3, %v1148_v27, 0.0  ;;  %v1156_v34 = vmul.f32 %v3676_v30, %v1147_v7  ;;  %v81_v7 = vld [vmem:[#allocation5 + $0x88] sm:$0xff] }
 0x6a7   :  { %1153 = vadd.xlane.f32.xlu0 %v1152_v29  ;;  %v78_v29 = vld [vmem:[#allocation5 + $0x70] sm:$0xff]  ;;  %v77_v30 = vld [vmem:[#allocation5 + $0x68] sm:$0xff] }
 0x6bd   :  { %1159 = vrot.lane.b32.xlu0 %v3882_v10, %s3832_s9  ;;  %v1246_v10 = vld [vmem:[#allocation5 + $0x38] sm:$0xff] }
 0x72f   :  { %v3458_v31 = vpop.f32.mrf.mxu1 }
 0x730   :  { %v1154_v32 = vpop.xlane.xlu0 %1153 }
 0x731   :  { %3677 = vrcp.f32 %v1154_v32  ;;  %v949_v33 = vpop.f32.mrf.mxu1  ;;  %v3208_v32 = vld [vmem:[#allocation7 + $0x2] ss:$0 sm:$0xff] }
 0x732   :  { %3461 = vmatprep.mubr.msk.f32.mxu1 %vm186_vm1, %v949_v33 }
 0x733   :  { %3462 = vmatmul.mubr.msk.f32.vlgmr.msra.gmra.mxu1 %vm186_vm1, %v3458_v31  ;;  %v76_v31 = vld [vmem:[#allocation5 + $0x60] sm:$0xff] }
 0x734   :  { %3472 = vmatpush3.msra.mxu1 %v1162_v8  ;;  %3475 = vmatprep.mubr.msk.f32.mxu1 %vm274_vm3, %v1156_v34  ;;  %v1160_v35 = vpop.permute.xlu0 %1159 }
 0x735   :  { %3473 = vmatprep.subr.mxu1 %v1160_v35 }
 0x736   :  { %3474 = vmatpush3.msra.mxu1 %v1160_v35 }
 0x737   :  { %3478 = vmatprep.subr.mxu1 %v1246_v10 }
 0x73e   :  { %v3678_v36 = vpop.eup %3677 }
 0x73f   :  { %v1158_v37 = vmul.f32 %v3678_v36, %v1148_v27  ;;  %v79_v27 = vld [vmem:[#allocation5 + $0x78] sm:$0xff] }
 0x741   :  { %3476 = vmatmul.mubr.msk.f32.vlgmr.msra.gmra.mxu1 %vm274_vm3, %v1158_v37 }
 0x742   :  { %3479 = vmatpush3.msra.mxu1 %v1246_v10 }
 0x743   :  { %3494 = vmatprep.subr.mxu1 %v83_v4 }
 0x7f3   :  { %v3463_v38 = vpop.f32.mrf.mxu1 }
 0x7f4   :  { %v1041_v40 = vadd.f32 %v3463_v38, %v3992_v39  ;;  %v3211_v38 = vld [vmem:[#allocation7 + $0x3] ss:$0 sm:$0xff] }
 0x7f5   :  { %v1031_v42 = vpop.f32.mrf.mxu1 }
 0x7f6   :  { %v1040_v43 = vadd.f32 %v1031_v42, %v3994_v41 }
 0x801   :  { %v3477_v44 = vpop.f32.mrf.mxu1 }
 0x803   :  { %v1237_v45 = vpop.f32.mrf.mxu1 }
 0x804   :  { %3480 = vmatprep.mubr.msk.f32.mxu1 %vm186_vm1, %v1237_v45 }
 0x805   :  { %3481 = vmatmul.mubr.msk.f32.vlgmr.msra.gmra.mxu1 %vm186_vm1, %v3477_v44 }
 0x806   :  { %3495 = vmatpush3.msra.mxu1 %v83_v4 }
 0x807   :  { %3496 = vmatprep.subr.mxu1 %v82_v6 }
 0x808   :  { %3497 = vmatpush3.msra.mxu1 %v82_v6 }
 0x809   :  { %3498 = vmatprep.subr.mxu1 %v81_v7 }
 0x80a   :  { %3499 = vmatpush3.msra.mxu1 %v81_v7 }
 0x80b   :  { %3500 = vmatprep.subr.mxu1 %v80_v9 }
 0x80c   :  { %3501 = vmatpush3.msra.mxu1 %v80_v9 }
 0x80d   :  { %3502 = vmatprep.subr.mxu1 %v79_v27 }
 0x80e   :  { %3503 = vmatpush3.msra.mxu1 %v79_v27 }
 0x80f   :  { %3504 = vmatprep.subr.mxu1 %v78_v29 }
 0x810   :  { %3505 = vmatpush3.msra.mxu1 %v78_v29 }
 0x811   :  { %3506 = vmatprep.subr.mxu1 %v77_v30 }
 0x812   :  { %3507 = vmatpush3.msra.mxu1 %v77_v30 }
 0x813   :  { %3508 = vmatprep.subr.mxu1 %v76_v31 }
 0x814   :  { %3509 = vmatpush3.msra.mxu1 %v76_v31 }
 0x8c5   :  { %v3482_v47 = vpop.f32.mrf.mxu1 }
 0x8c6   :  { %v1329_v48 = vadd.f32 %v3482_v47, %v1041_v40 }
 0x8c7   :  { %v1319_v49 = vpop.f32.mrf.mxu1 }
 0x8c8   :  { %v1335_v50 = vadd.f32 %v3205_v46, %v1329_v48  ;;  %v1328_v51 = vadd.f32 %v1319_v49, %v1040_v43 }
 0x8ca   :  { %v1334_v52 = vadd.f32 %v3205_v46, %v1328_v51  ;;  %v1337_v53 = vadd.f32 %v1335_v50, %v3876_v5 }
 0x8cc   :  { %v1341_v39 = vsel %vm96_vm0, %v1337_v53, 0.0  ;;  %v1336_v54 = vadd.f32 %v1334_v52, %v3872_v2  ;;  %v74_v2 = vld [vmem:[#allocation5 + $0x50] sm:$0xff] }
 0x8cd   :  { %1342 = vadd.xlane.f32.xlu0 %v1341_v39  ;;  %3485 = vmatprep.subr.mxu0 %v74_v2 }
 0x8ce   :  { %v1338_v41 = vsel %vm96_vm0, %v1336_v54, 0.0  ;;  %3486 = vmatpush3.msra.mxu0 %v74_v2 }
 0x8cf   :  { %1339 = vadd.xlane.f32.xlu1 %v1338_v41  ;;  %3487 = vmatprep.subr.mxu0 %v73_v1 }
 0x8d0   :  { %3488 = vmatpush3.msra.mxu0 %v73_v1 }
 0x8d1   :  { %3489 = vmatprep.subr.mxu0 %v72_v3 }
 0x8d2   :  { %3490 = vmatpush3.msra.mxu0 %v72_v3  ;;  %v3214_v3 = vld [vmem:[#allocation7 + $0x6] ss:$0 sm:$0xff] }
 0x956   :  { %v1343_v55 = vpop.xlane.xlu0 %1342 }
 0x957   :  { %v1346_v56 = vmul.f32 0.03125, %v1343_v55 }
 0x958   :  { %v1340_v57 = vpop.xlane.xlu1 %1339 }
 0x959   :  { %v1348_v58 = vsub.f32 %v1337_v53, %v1346_v56  ;;  %v1345_v59 = vmul.f32 0.03125, %v1340_v57  ;;  %v1594_v57 = vld [vmem:[#allocation5 + $0xb8] sm:$0xff] }
 0x95a   :  { %3513 = vmatprep.subr.mxu0 %v1594_v57 }
 0x95b   :  { %v1347_v60 = vsub.f32 %v1336_v54, %v1345_v59  ;;  %v1350_v61 = vmul.f32 %v1348_v58, %v1348_v58  ;;  %v1592_v59 = vld [vmem:[#allocation5 + $0xa8] sm:$0xff] }
 0x95d   :  { %v1354_v62 = vsel %vm96_vm0, %v1350_v61, 0.0  ;;  %v1349_v63 = vmul.f32 %v1347_v60, %v1347_v60 }
 0x95e   :  { %1355 = vadd.xlane.f32.xlu0 %v1354_v62 }
 0x95f   :  { %v1351_v5 = vsel %vm96_vm0, %v1349_v63, 0.0 }
 0x960   :  { %1352 = vadd.xlane.f32.xlu1 %v1351_v5 }
 0x9e7   :  { %v1356_v11 = vpop.xlane.xlu0 %1355 }
 0x9e8   :  { %v1358_v13 = vmul.f32 0.03125, %v1356_v11  ;;  %v3215_v11 = vld [vmem:[#allocation7 + $0x7] ss:$0 sm:$0xff] }
 0x9e9   :  { %v1353_v14 = vpop.xlane.xlu1 %1352 }
 0x9ea   :  { %v1360_v12 = vadd.f32 1e-05, %v1358_v13  ;;  %v1357_v15 = vmul.f32 0.03125, %v1353_v14 }
 0x9ec   :  { %3679 = vrsqrt.f32 %v1360_v12  ;;  %v1359_v16 = vadd.f32 1e-05, %v1357_v15  ;;  %v3216_v15 = vld [vmem:[#allocation7 + $0x8] ss:$0 sm:$0xff] }
 0x9ee   :  { %3681 = vrsqrt.f32 %v1359_v16 }
 0x9f9   :  { %v3680_v17 = vpop.eup %3679 }
 0x9fa   :  { %v1364_v19 = vmul.f32 %v3680_v17, %v1348_v58  ;;  %v1593_v58 = vld [vmem:[#allocation5 + $0xb0] sm:$0xff] }
 0x9fb   :  { %v3682_v20 = vpop.eup %3681 }
 0x9fc   :  { %v1363_v21 = vmul.f32 %v3682_v20, %v1347_v60  ;;  %v1370_v8 = vmul.f32 %v3206_v18, %v1364_v19  ;;  %v1591_v60 = vld [vmem:[#allocation5 + $0xa0] sm:$0xff] }
 0x9fe   :  { %v1369_v23 = vmul.f32 %v3206_v18, %v1363_v21  ;;  %v1376_v25 = vadd.f32 %v3207_v22, %v1370_v8 }
 0xa00   :  { %v1375_v24 = vadd.f32 %v3207_v22, %v1369_v23 }
 0xa02   :  { %3491 = vmatprep.mubr.msk.f32.mxu0 %vm96_vm0, %v1375_v24 }
 0xa03   :  { %3492 = vmatmul.mubr.msk.f32.vlgmr.msra.gmra.mxu0 %vm96_vm0, %v1376_v25 }
 0xa04   :  { %3514 = vmatpush3.msra.mxu0 %v1594_v57 }
 0xa05   :  { %3515 = vmatprep.subr.mxu0 %v1593_v58 }
 0xa06   :  { %3516 = vmatpush3.msra.mxu0 %v1593_v58 }
 0xa07   :  { %3517 = vmatprep.subr.mxu0 %v1592_v59 }
 0xa08   :  { %3518 = vmatpush3.msra.mxu0 %v1592_v59 }
 0xa09   :  { %3519 = vmatprep.subr.mxu0 %v1591_v60 }
 0xa0a   :  { %3520 = vmatpush3.msra.mxu0 %v1591_v60 }
 0xac3   :  { %v3493_v33 = vpop.f32.mrf.mxu0 }
 0xac4   :  { %v1459_v34 = vadd.f32 %v3493_v33, %v3208_v32 }
 0xac5   :  { %v1453_v35 = vpop.f32.mrf.mxu0 }
 0xac6   :  { %v1454_v36 = vadd.f32 %v3208_v32, %v1453_v35  ;;  %v1463_v10 = vmax.f32 %v1459_v34, 0.0 }
 0xac8   :  { %v1462_v37 = vmax.f32 %v1454_v36, 0.0 }
 0xaca   :  { %3510 = vmatprep.mubr.msk.f32.mxu1 %vm1468_vm5, %v1462_v37 }
 0xacb   :  { %3511 = vmatmul.mubr.msk.f32.vlgmr.msra.gmra.mxu1 %vm1468_vm5, %v1463_v10 }
 0xb8b   :  { %v3512_v40 = vpop.f32.mrf.mxu1 }
 0xb8c   :  { %v1547_v42 = vadd.f32 %v3512_v40, %v3211_v38 }
 0xb8d   :  { %v1541_v43 = vpop.f32.mrf.mxu1 }
 0xb8e   :  { %v1542_v44 = vadd.f32 %v3211_v38, %v1541_v43  ;;  %v1551_v45 = vadd.f32 %v1547_v42, %v1376_v25 }
 0xb90   :  { %v1555_v46 = vsel %vm96_vm0, %v1551_v45, 0.0  ;;  %v1550_v47 = vadd.f32 %v1542_v44, %v1375_v24 }
 0xb91   :  { %1556 = vadd.xlane.f32.xlu0 %v1555_v46 }
 0xb92   :  { %v1552_v48 = vsel %vm96_vm0, %v1550_v47, 0.0 }
 0xb93   :  { %1553 = vadd.xlane.f32.xlu1 %v1552_v48 }
 0xc1a   :  { %v1557_v49 = vpop.xlane.xlu0 %1556 }
 0xc1b   :  { %v1559_v50 = vmul.f32 0.03125, %v1557_v49 }
 0xc1c   :  { %v1554_v51 = vpop.xlane.xlu1 %1553 }
 0xc1d   :  { %v1561_v52 = vsub.f32 %v1551_v45, %v1559_v50  ;;  %v1558_v53 = vmul.f32 0.03125, %v1554_v51 }
 0xc1f   :  { %v1560_v39 = vsub.f32 %v1550_v47, %v1558_v53  ;;  %v1563_v54 = vmul.f32 %v1561_v52, %v1561_v52 }
 0xc21   :  { %v1567_v41 = vsel %vm96_vm0, %v1563_v54, 0.0  ;;  %v1562_v55 = vmul.f32 %v1560_v39, %v1560_v39 }
 0xc22   :  { %1568 = vadd.xlane.f32.xlu0 %v1567_v41  ;;  %v1907_v41 = vld [vmem:[#allocation5 + $0xc0] sm:$0xff] }
 0xc23   :  { %v1564_v56 = vsel %vm96_vm0, %v1562_v55, 0.0 }
 0xc24   :  { %1565 = vadd.xlane.f32.xlu1 %v1564_v56 }
 0xcab   :  { %v1569_v61 = vpop.xlane.xlu0 %1568 }
 0xcac   :  { %v1571_v62 = vmul.f32 0.03125, %v1569_v61 }
 0xcad   :  { %v1566_v63 = vpop.xlane.xlu1 %1565 }
 0xcae   :  { %v1573_v5 = vadd.f32 1e-05, %v1571_v62  ;;  %v1570_v0 = vmul.f32 0.03125, %v1566_v63 }
 0xcb0   :  { %3683 = vrsqrt.f32 %v1573_v5  ;;  %v1572_v2 = vadd.f32 1e-05, %v1570_v0 }
 0xcb2   :  { %3685 = vrsqrt.f32 %v1572_v2 }
 0xcbd   :  { %v3684_v1 = vpop.eup %3683 }
 0xcbe   :  { %v1577_v4 = vmul.f32 %v3684_v1, %v1561_v52 }
 0xcbf   :  { %v3686_v6 = vpop.eup %3685 }
 0xcc0   :  { %v1576_v7 = vmul.f32 %v3686_v6, %v1560_v39  ;;  %v1583_v9 = vmul.f32 %v3214_v3, %v1577_v4 }
 0xcc2   :  { %v1582_v13 = vmul.f32 %v3214_v3, %v1576_v7  ;;  %v4054_v12 = vadd.f32 %v3215_v11, %v1583_v9 }
 0xcc4   :  { %v4052_v14 = vadd.f32 %v3215_v11, %v1582_v13 }
 0xcc6   :  { %3521 = vmatprep.mubr.msk.f32.mxu0 %vm96_vm0, %v4052_v14 }
 0xcc7   :  { %3522 = vmatmul.mubr.msk.f32.vlgmr.msra.gmra.mxu0 %vm96_vm0, %v4054_v12 }
 0xd87   :  { %v3523_v16 = vpop.f32.mrf.mxu0 }
 0xd88   :  { %v4060_v17 = vadd.f32 %v3523_v16, %v3216_v15 }
 0xd89   :  { %v1692_v18 = vpop.f32.mrf.mxu0 }
 0xd8a   :  { %v4062_v19 = vadd.f32 %v3216_v15, %v1692_v18  ;;  %1707 = vrot.lane.b32.xlu1 %v4060_v17, %s3823_s2  ;;  %v4078_v22 = vmul.f32 0.35355338, %v4060_v17 }
 0xd8c   :  { %1705 = vrot.lane.b32.xlu0 %v4062_v19, %s3823_s2  ;;  %v4069_v20 = vmul.f32 0.35355338, %v4062_v19 }
 0xd8e   :  { %3528 = vmatprep.mubr.msk.f32.mxu0 %vm186_vm1, %v4069_v20 }
 0xdfc   :  { %v1708_v21 = vpop.permute.xlu1 %1707 }
 0xdfd   :  { %3524 = vmatprep.subr.msk.mxu0 %vm186_vm1, %v1708_v21 }
 0xdfe   :  { %3525 = vmatpush3.xpose.msk.msra.mxu0 %vm186_vm1, %v1708_v21  ;;  %v1706_v8 = vpop.permute.xlu0 %1705 }
 0xdff   :  { %3526 = vmatprep.subr.msk.mxu0 %vm186_vm1, %v1706_v8 }
 0xe02   :  { %3527 = vmatpush3.xpose.msk.msra.mxu0 %vm186_vm1, %v1706_v8  ;;  %v2112_v8 = vld [vmem:[#allocation5 + $0xc8] sm:$0xff] }
 0xe05   :  { %3529 = vmatmul.mubr.msk.f32.vlgmr.msra.gmra.mxu0 %vm186_vm1, %v4078_v22 }
 0xec5   :  { %v3530_v23 = vpop.f32.mrf.mxu0 }
 0xec6   :  { %v1795_v24 = vsel %vm3916_vm2, %v3530_v23, -1e+30 }
 0xec7   :  { %v1785_v25 = vpop.f32.mrf.mxu0  ;;  %v1799_v27 = vsel %vm274_vm3, %v1795_v24, -inf }
 0xec8   :  { %v1794_v29 = vsel %vm3920_vm4, %v1785_v25, -1e+30  ;;  %1800 = vmax.xlane.f32.xlu0 %v1799_v27 }
 0xec9   :  { %v1796_v30 = vsel %vm274_vm3, %v1794_v29, -inf }
 0xeca   :  { %1797 = vmax.xlane.f32.xlu1 %v1796_v30 }
 0xedb   :  { %1822 = vrot.lane.b32.xlu1 %v4060_v17, %s3825_s29 }
 0xedf   :  { %1914 = vrot.lane.b32.xlu1 %v4060_v17, %s3822_s0 }
 0xee3   :  { %1912 = vrot.lane.b32.xlu1 %v4062_v19, %s3822_s0 }
 0xf51   :  { %v1801_v31 = vpop.xlane.xlu0 %1800 }
 0xf52   :  { %v1803_v32 = vsub.f32 %v1795_v24, %v1801_v31 }
 0xf53   :  { %v1798_v33 = vpop.xlane.xlu1 %1797 }
 0xf54   :  { %v1806_v34 = vmul.f32 1.442695, %v1803_v32  ;;  %v1802_v35 = vsub.f32 %v1794_v29, %v1798_v33 }
 0xf56   :  { %3687 = vpow2.f32 %v1806_v34  ;;  %v1804_v36 = vmul.f32 1.442695, %v1802_v35 }
 0xf57   :  { %v1823_v37 = vpop.permute.xlu1 %1822 }
 0xf58   :  { %3689 = vpow2.f32 %v1804_v36  ;;  %3531 = vmatprep.subr.mxu1 %v1823_v37 }
 0xf59   :  { %3532 = vmatpush3.msra.mxu1 %v1823_v37 }
 0xf5b   :  { %v1915_v45 = vpop.permute.xlu1 %1914 }
 0xf5f   :  { %v1913_v46 = vpop.permute.xlu1 %1912 }
 0xf63   :  { %v3688_v10 = vpop.eup %3687 }
 0xf64   :  { %v1809_v38 = vsel %vm3916_vm2, %v3688_v10, 0.0 }
 0xf65   :  { %v3690_v40 = vpop.eup %3689  ;;  %v1813_v42 = vsel %vm274_vm3, %v1809_v38, 0.0 }
 0xf66   :  { %1814 = vadd.xlane.f32.xlu0 %v1813_v42  ;;  %v1808_v43 = vsel %vm3920_vm4, %v3690_v40, 0.0 }
 0xf67   :  { %v1810_v44 = vsel %vm274_vm3, %v1808_v43, 0.0 }
 0xf68   :  { %1811 = vadd.xlane.f32.xlu1 %v1810_v44 }
 0xf79   :  { %1910 = vrot.lane.b32.xlu1 %v4078_v22, %s3824_s28 }
 0xf7c   :  { %1820 = vrot.lane.b32.xlu0 %v4062_v19, %s3825_s29 }
 0xf80   :  { %1908 = vrot.lane.b32.xlu0 %v4069_v20, %s3824_s28 }
 0xfef   :  { %v1815_v47 = vpop.xlane.xlu0 %1814 }
 0xff0   :  { %3691 = vrcp.f32 %v1815_v47 }
 0xff1   :  { %v1812_v48 = vpop.xlane.xlu1 %1811 }
 0xff2   :  { %3693 = vrcp.f32 %v1812_v48 }
 0xff3   :  { %v1821_v49 = vpop.permute.xlu0 %1820 }
 0xff4   :  { %3533 = vmatprep.subr.mxu1 %v1821_v49 }
 0xff5   :  { %3534 = vmatpush3.msra.mxu1 %v1821_v49  ;;  %v1911_v54 = vpop.permute.xlu1 %1910 }
 0xff6   :  { %3538 = vmatprep.subr.msk.mxu1 %vm186_vm1, %v1915_v45 }
 0xff7   :  { %v1909_v39 = vpop.permute.xlu0 %1908 }
 0xffd   :  { %v3692_v50 = vpop.eup %3691 }
 0xffe   :  { %v1819_v53 = vmul.f32 %v3692_v50, %v1809_v38 }
 0xfff   :  { %v3694_v51 = vpop.eup %3693 }
0x1000   :  { %v1817_v52 = vmul.f32 %v3694_v51, %v1808_v43 }
0x1002   :  { %3535 = vmatprep.mubr.msk.f32.mxu1 %vm274_vm3, %v1817_v52 }
0x1003   :  { %3536 = vmatmul.mubr.msk.f32.vlgmr.msra.gmra.mxu1 %vm274_vm3, %v1819_v53 }
0x1004   :  { %3539 = vmatpush3.xpose.msk.msra.mxu1 %vm186_vm1, %v1915_v45  ;;  %3542 = vmatprep.mubr.msk.f32.mxu1 %vm186_vm1, %v1909_v39 }
0x1005   :  { %3540 = vmatprep.subr.msk.mxu1 %vm186_vm1, %v1913_v46 }
0x1008   :  { %3541 = vmatpush3.xpose.msk.msra.mxu1 %vm186_vm1, %v1913_v46 }
0x1009   :  { %3557 = vmatprep.subr.mxu1 %v1907_v41 }
0x100b   :  { %3543 = vmatmul.mubr.msk.f32.vlgmr.msra.gmra.mxu1 %vm186_vm1, %v1911_v54 }
0x100c   :  { %3558 = vmatpush3.msra.mxu1 %v1907_v41 }
0x10c3   :  { %v3537_v55 = vpop.f32.mrf.mxu1 }
0x10c5   :  { %v1898_v56 = vpop.f32.mrf.mxu1 }
0x10c6   :  { %3559 = vmatprep.mubr.msk.f32.mxu1 %vm186_vm1, %v1898_v56 }
0x10c7   :  { %3560 = vmatmul.mubr.msk.f32.vlgmr.msra.gmra.mxu1 %vm186_vm1, %v3537_v55 }
0x10cb   :  { %v3544_v57 = vpop.f32.mrf.mxu1 }
0x10cc   :  { %v2000_v58 = vsel %vm3916_vm2, %v3544_v57, -1e+30 }
0x10cd   :  { %v1990_v59 = vpop.f32.mrf.mxu1  ;;  %v2004_v60 = vsel %vm274_vm3, %v2000_v58, -inf }
0x10ce   :  { %v1999_v61 = vsel %vm3920_vm4, %v1990_v59, -1e+30  ;;  %2005 = vmax.xlane.f32.xlu1 %v2004_v60 }
0x10cf   :  { %v2001_v62 = vsel %vm274_vm3, %v1999_v61, -inf }
0x10d0   :  { %2002 = vmax.xlane.f32.xlu0 %v2001_v62 }
0x10df   :  { %2027 = vrot.lane.b32.xlu1 %v4060_v17, %s3826_s30 }
0x10e3   :  { %2281 = vrot.lane.b32.xlu1 %v4060_v17, %s3827_s4 }
0x10e7   :  { %2279 = vrot.lane.b32.xlu1 %v4062_v19, %s3827_s4 }
0x10eb   :  { %2277 = vrot.lane.b32.xlu1 %v4078_v22, %s3828_s5 }
0x10ef   :  { %2567 = vrot.lane.b32.xlu1 %v4062_v19, %s3829_s6 }
0x10f3   :  { %2565 = vrot.lane.b32.xlu1 %v4078_v22, %s3830_s7 }
0x1157   :  { %v2006_v63 = vpop.xlane.xlu1 %2005 }
0x1158   :  { %v2008_v5 = vsub.f32 %v2000_v58, %v2006_v63 }
0x1159   :  { %v2003_v0 = vpop.xlane.xlu0 %2002 }
0x115a   :  { %v2011_v2 = vmul.f32 1.442695, %v2008_v5  ;;  %v2007_v1 = vsub.f32 %v1999_v61, %v2003_v0 }
0x115b   :  { %v2028_v3 = vpop.permute.xlu1 %2027 }
0x115c   :  { %3695 = vpow2.f32 %v2011_v2  ;;  %v2009_v4 = vmul.f32 1.442695, %v2007_v1  ;;  %3545 = vmatprep.subr.mxu0 %v2028_v3 }
0x115d   :  { %3546 = vmatpush3.msra.mxu0 %v2028_v3 }
0x115e   :  { %3697 = vpow2.f32 %v2009_v4 }
0x115f   :  { %v2282_v27 = vpop.permute.xlu1 %2281 }
0x1163   :  { %v2280_v30 = vpop.permute.xlu1 %2279 }
0x1167   :  { %v2278_v33 = vpop.permute.xlu1 %2277 }
0x1169   :  { %v3696_v6 = vpop.eup %3695 }
0x116a   :  { %v2014_v7 = vsel %vm3916_vm2, %v3696_v6, 0.0 }
0x116b   :  { %v3698_v9 = vpop.eup %3697  ;;  %v2018_v11 = vsel %vm274_vm3, %v2014_v7, 0.0  ;;  %v2568_v35 = vpop.permute.xlu1 %2567 }
0x116c   :  { %2019 = vadd.xlane.f32.xlu0 %v2018_v11  ;;  %v2013_v13 = vsel %vm3920_vm4, %v3698_v9, 0.0  ;;  %v2479_v9 = vld [vmem:[#allocation5 + $0xd0] sm:$0xff] }
0x116d   :  { %v2015_v15 = vsel %vm274_vm3, %v2013_v13, 0.0 }
0x116f   :  { %v2566_v36 = vpop.permute.xlu1 %2565 }
0x1170   :  { %2016 = vadd.xlane.f32.xlu0 %v2015_v15 }
0x1186   :  { %2025 = vrot.lane.b32.xlu0 %v4062_v19, %s3826_s30 }
0x118a   :  { %2275 = vrot.lane.b32.xlu0 %v4069_v20, %s3828_s5 }
0x118e   :  { %2569 = vrot.lane.b32.xlu0 %v4060_v17, %s3829_s6 }
0x1192   :  { %2563 = vrot.lane.b32.xlu0 %v4069_v20, %s3830_s7 }
0x11f5   :  { %v2020_v16 = vpop.xlane.xlu0 %2019 }
0x11f6   :  { %3699 = vrcp.f32 %v2020_v16 }
0x11f9   :  { %v2017_v18 = vpop.xlane.xlu0 %2016 }
0x11fa   :  { %3701 = vrcp.f32 %v2017_v18 }
0x11fd   :  { %v2026_v21 = vpop.permute.xlu0 %2025 }
0x11fe   :  { %3547 = vmatprep.subr.mxu0 %v2026_v21 }
0x11ff   :  { %3548 = vmatpush3.msra.mxu0 %v2026_v21 }
0x1200   :  { %3552 = vmatprep.subr.mxu0 %v2112_v8 }
0x1201   :  { %v2276_v20 = vpop.permute.xlu0 %2275 }
0x1203   :  { %v3700_v22 = vpop.eup %3699 }
0x1204   :  { %v2024_v25 = vmul.f32 %v3700_v22, %v2014_v7 }
0x1205   :  { %v2570_v32 = vpop.permute.xlu0 %2569 }
0x1207   :  { %v3702_v23 = vpop.eup %3701 }
0x1208   :  { %v2022_v24 = vmul.f32 %v3702_v23, %v2013_v13 }
0x1209   :  { %v2564_v34 = vpop.permute.xlu0 %2563 }
0x120a   :  { %3549 = vmatprep.mubr.msk.f32.mxu0 %vm274_vm3, %v2022_v24 }
0x120b   :  { %3550 = vmatmul.mubr.msk.f32.vlgmr.msra.gmra.mxu0 %vm274_vm3, %v2024_v25  ;;  %v3561_v25 = vpop.f32.mrf.mxu1 }
0x120c   :  { %3553 = vmatpush3.msra.mxu0 %v2112_v8 }
0x120d   :  { %3562 = vmatprep.subr.msk.mxu0 %vm186_vm1, %v2282_v27 }
0x12cb   :  { %v3551_v29 = vpop.f32.mrf.mxu0 }
0x12cd   :  { %v2103_v31 = vpop.f32.mrf.mxu0 }
0x12ce   :  { %3554 = vmatprep.mubr.msk.f32.mxu0 %vm186_vm1, %v2103_v31 }
0x12cf   :  { %3555 = vmatmul.mubr.msk.f32.vlgmr.msra.gmra.mxu0 %vm186_vm1, %v3551_v29 }
0x12d0   :  { %3563 = vmatpush3.xpose.msk.msra.mxu0 %vm186_vm1, %v2282_v27  ;;  %3566 = vmatprep.mubr.msk.f32.mxu0 %vm186_vm1, %v2276_v20  ;;  %v2266_v27 = vpop.f32.mrf.mxu1 }
0x12d1   :  { %3564 = vmatprep.subr.msk.mxu0 %vm186_vm1, %v2280_v30 }
0x12d4   :  { %3565 = vmatpush3.xpose.msk.msra.mxu0 %vm186_vm1, %v2280_v30 }
0x12d5   :  { %3581 = vmatprep.subr.msk.mxu0 %vm186_vm1, %v2570_v32 }
0x12d7   :  { %3567 = vmatmul.mubr.msk.f32.vlgmr.msra.gmra.mxu0 %vm186_vm1, %v2278_v33 }
0x12d8   :  { %3582 = vmatpush3.xpose.msk.msra.mxu0 %vm186_vm1, %v2570_v32  ;;  %3585 = vmatprep.mubr.msk.f32.mxu0 %vm186_vm1, %v2564_v34  ;;  %v2767_v34 = vld [vmem:[#allocation5 + $0xd8] sm:$0xff] }
0x12d9   :  { %3583 = vmatprep.subr.msk.mxu0 %vm186_vm1, %v2568_v35 }
0x12dc   :  { %3584 = vmatpush3.xpose.msk.msra.mxu0 %vm186_vm1, %v2568_v35 }
0x12df   :  { %3586 = vmatmul.mubr.msk.f32.vlgmr.msra.gmra.mxu0 %vm186_vm1, %v2566_v36 }
0x138f   :  { %v4164_v37 = vpop.f32.mrf.mxu0 }
0x1390   :  { %v2272_v35 = vadd.f32 %v3561_v25, %v4164_v37  ;;  %v1602_v25 = vld [vmem:[#allocation5 + $0x118] sm:$0xff] }
0x1391   :  { %v4166_v10 = vpop.f32.mrf.mxu0 }
0x1397   :  { %v3568_v38 = vpop.f32.mrf.mxu0 }
0x1398   :  { %v2367_v40 = vsel %vm3916_vm2, %v3568_v38, -1e+30  ;;  %v2267_v38 = vadd.f32 %v2266_v27, %v4166_v10  ;;  %v1601_v27 = vld [vmem:[#allocation5 + $0x110] sm:$0xff] }
0x1399   :  { %v2357_v42 = vpop.f32.mrf.mxu0  ;;  %v2371_v43 = vsel %vm274_vm3, %v2367_v40, -inf }
0x139a   :  { %v2366_v44 = vsel %vm3920_vm4, %v2357_v42, -1e+30  ;;  %2372 = vmax.xlane.f32.xlu1 %v2371_v43 }
0x139b   :  { %v2368_v45 = vsel %vm274_vm3, %v2366_v44, -inf }
0x139c   :  { %2369 = vmax.xlane.f32.xlu0 %v2368_v45 }
0x139f   :  { %v3587_v46 = vpop.f32.mrf.mxu0 }
0x13a0   :  { %v2655_v1 = vsel %vm3916_vm2, %v3587_v46, -1e+30  ;;  %v3251_v46 = vld [vmem:[#allocation7 + $0x9] ss:$0 sm:$0xff] }
0x13a1   :  { %v2645_v47 = vpop.f32.mrf.mxu0  ;;  %v2659_v3 = vsel %vm274_vm3, %v2655_v1, -inf }
0x13a2   :  { %v2654_v48 = vsel %vm3920_vm4, %v2645_v47, -1e+30 }
0x13a3   :  { %v2656_v49 = vsel %vm274_vm3, %v2654_v48, -inf }
0x13ab   :  { %2394 = vrot.lane.b32.xlu1 %v4060_v17, %s3831_s8 }
0x13cf   :  { %2657 = vmax.xlane.f32.xlu1 %v2656_v49 }
0x1423   :  { %v2373_v50 = vpop.xlane.xlu1 %2372 }
0x1424   :  { %v2375_v51 = vsub.f32 %v2367_v40, %v2373_v50 }
0x1425   :  { %v2370_v52 = vpop.xlane.xlu0 %2369 }
0x1426   :  { %v2378_v53 = vmul.f32 1.442695, %v2375_v51  ;;  %v2374_v39 = vsub.f32 %v2366_v44, %v2370_v52 }
0x1427   :  { %v2395_v54 = vpop.permute.xlu1 %2394 }
0x1428   :  { %3703 = vpow2.f32 %v2378_v53  ;;  %v2376_v41 = vmul.f32 1.442695, %v2374_v39  ;;  %3569 = vmatprep.subr.mxu1 %v2395_v54 }
0x1429   :  { %3570 = vmatpush3.msra.mxu1 %v2395_v54 }
0x142a   :  { %3705 = vpow2.f32 %v2376_v41 }
0x1435   :  { %v3704_v55 = vpop.eup %3703 }
0x1436   :  { %v2381_v56 = vsel %vm3916_vm2, %v3704_v55, 0.0 }
0x1437   :  { %v3706_v57 = vpop.eup %3705  ;;  %v2385_v58 = vsel %vm274_vm3, %v2381_v56, 0.0 }
0x1438   :  { %2386 = vadd.xlane.f32.xlu0 %v2385_v58  ;;  %v2380_v59 = vsel %vm3920_vm4, %v3706_v57, 0.0 }
0x1439   :  { %v2382_v60 = vsel %vm274_vm3, %v2380_v59, 0.0 }
0x143c   :  { %2383 = vadd.xlane.f32.xlu0 %v2382_v60 }
0x1452   :  { %2392 = vrot.lane.b32.xlu0 %v4062_v19, %s3831_s8 }
0x1458   :  { %v2658_v61 = vpop.xlane.xlu1 %2657 }
0x1459   :  { %v2662_v62 = vsub.f32 %v2654_v48, %v2658_v61 }
0x145b   :  { %v2664_v63 = vmul.f32 1.442695, %v2662_v62  ;;  %v1598_v62 = vld [vmem:[#allocation5 + $0xf8] sm:$0xff] }
0x145c   :  { %3600 = vmatprep.subr.mxu0 %v1598_v62 }
0x145d   :  { %3707 = vpow2.f32 %v2664_v63  ;;  %3601 = vmatpush3.msra.mxu0 %v1598_v62  ;;  %v1596_v63 = vld [vmem:[#allocation5 + $0xe8] sm:$0xff] }
0x145e   :  { %v3261_v62 = vld [vmem:[#allocation7 + $0xf] ss:$0 sm:$0xff] }
0x146a   :  { %v3708_v5 = vpop.eup %3707 }
0x146b   :  { %v2668_v0 = vsel %vm3920_vm4, %v3708_v5, 0.0  ;;  %v1595_v5 = vld [vmem:[#allocation5 + $0xe0] sm:$0xff] }
0x146c   :  { %v2670_v2 = vsel %vm274_vm3, %v2668_v0, 0.0 }
0x146d   :  { %2671 = vadd.xlane.f32.xlu1 %v2670_v2  ;;  %v1605_v2 = vld [vmem:[#allocation5 + $0x130] sm:$0xff] }
0x1471   :  { %2660 = vmax.xlane.f32.xlu0 %v2659_v3  ;;  %v1603_v3 = vld [vmem:[#allocation5 + $0x120] sm:$0xff] }
0x147e   :  { %2682 = vrot.lane.b32.xlu1 %v4060_v17, %s3832_s9 }
0x14c1   :  { %v2387_v4 = vpop.xlane.xlu0 %2386 }
0x14c2   :  { %3709 = vrcp.f32 %v2387_v4 }
0x14c5   :  { %v2384_v6 = vpop.xlane.xlu0 %2383 }
0x14c6   :  { %3711 = vrcp.f32 %v2384_v6 }
0x14c9   :  { %v2393_v7 = vpop.permute.xlu0 %2392 }
0x14ca   :  { %3571 = vmatprep.subr.mxu1 %v2393_v7 }
0x14cb   :  { %3572 = vmatpush3.msra.mxu1 %v2393_v7 }
0x14cc   :  { %3576 = vmatprep.subr.mxu1 %v2479_v9 }
0x14cf   :  { %v3710_v28 = vpop.eup %3709 }
0x14d0   :  { %v2391_v15 = vmul.f32 %v3710_v28, %v2381_v56 }
0x14d3   :  { %v3712_v11 = vpop.eup %3711 }
0x14d4   :  { %v2389_v13 = vmul.f32 %v3712_v11, %v2380_v59 }
0x14d6   :  { %3573 = vmatprep.mubr.msk.f32.mxu1 %vm274_vm3, %v2389_v13 }
0x14d7   :  { %3574 = vmatmul.mubr.msk.f32.vlgmr.msra.gmra.mxu1 %vm274_vm3, %v2391_v15  ;;  %v3252_v15 = vld [vmem:[#allocation7 + $0xc] ss:$0 sm:$0xff] }
0x14d8   :  { %3577 = vmatpush3.msra.mxu1 %v2479_v9 }
0x14f6   :  { %v2672_v16 = vpop.xlane.xlu1 %2671 }
0x14fa   :  { %v2683_v17 = vpop.permute.xlu1 %2682  ;;  %v2661_v18 = vpop.xlane.xlu0 %2660 }
0x14fb   :  { %v2663_v21 = vsub.f32 %v2655_v1, %v2661_v18  ;;  %3588 = vmatprep.subr.mxu1 %v2683_v17  ;;  %v1604_v1 = vld [vmem:[#allocation5 + $0x128] sm:$0xff] }
0x14fd   :  { %v2666_v8 = vmul.f32 1.442695, %v2663_v21 }
0x14ff   :  { %3713 = vpow2.f32 %v2666_v8  ;;  %v3253_v8 = vld [vmem:[#allocation7 + $0xd] ss:$0 sm:$0xff] }
0x1500   :  { %3715 = vrcp.f32 %v2672_v16 }
0x150c   :  { %v3714_v22 = vpop.eup %3713 }
0x150d   :  { %v2669_v23 = vsel %vm3916_vm2, %v3714_v22, 0.0  ;;  %v3716_v20 = vpop.eup %3715 }
0x150e   :  { %v2673_v24 = vsel %vm274_vm3, %v2669_v23, 0.0  ;;  %v2677_v32 = vmul.f32 %v3716_v20, %v2668_v0  ;;  %v1606_v0 = vld [vmem:[#allocation5 + $0x138] sm:$0xff]  ;;  %v1600_v20 = vld [vmem:[#allocation5 + $0x108] sm:$0xff] }
0x150f   :  { %2674 = vadd.xlane.f32.xlu0 %v2673_v24 }
0x1525   :  { %2680 = vrot.lane.b32.xlu0 %v4062_v19, %s3832_s9 }
0x1597   :  { %v3575_v29 = vpop.f32.mrf.mxu1 }
0x1598   :  { %v2675_v30 = vpop.xlane.xlu0 %2674 }
0x1599   :  { %3717 = vrcp.f32 %v2675_v30  ;;  %v2470_v31 = vpop.f32.mrf.mxu1  ;;  %v3254_v30 = vld [vmem:[#allocation7 + $0xa] ss:$0 sm:$0xff] }
0x159a   :  { %3578 = vmatprep.mubr.msk.f32.mxu1 %vm186_vm1, %v2470_v31 }
0x159b   :  { %3579 = vmatmul.mubr.msk.f32.vlgmr.msra.gmra.mxu1 %vm186_vm1, %v3575_v29  ;;  %v1599_v29 = vld [vmem:[#allocation5 + $0x100] sm:$0xff] }
0x159c   :  { %3589 = vmatpush3.msra.mxu1 %v2683_v17  ;;  %3592 = vmatprep.mubr.msk.f32.mxu1 %vm274_vm3, %v2677_v32  ;;  %v2681_v26 = vpop.permute.xlu0 %2680 }
0x159d   :  { %3590 = vmatprep.subr.mxu1 %v2681_v26 }
0x159e   :  { %3591 = vmatpush3.msra.mxu1 %v2681_v26 }
0x159f   :  { %3595 = vmatprep.subr.mxu1 %v2767_v34 }
0x15a6   :  { %v3718_v19 = vpop.eup %3717 }
0x15a7   :  { %v2679_v33 = vmul.f32 %v3718_v19, %v2669_v23 }
0x15a9   :  { %3593 = vmatmul.mubr.msk.f32.vlgmr.msra.gmra.mxu1 %vm274_vm3, %v2679_v33 }
0x15aa   :  { %3596 = vmatpush3.msra.mxu1 %v2767_v34 }
0x15ab   :  { %3611 = vmatprep.subr.mxu1 %v1606_v0 }
0x165b   :  { %v3580_v36 = vpop.f32.mrf.mxu1 }
0x165c   :  { %v2562_v40 = vadd.f32 %v3580_v36, %v2272_v35  ;;  %v3257_v35 = vld [vmem:[#allocation7 + $0xb] ss:$0 sm:$0xff] }
0x165d   :  { %v2552_v42 = vpop.f32.mrf.mxu1 }
0x165e   :  { %v2561_v43 = vadd.f32 %v2552_v42, %v2267_v38 }
0x1669   :  { %v3594_v44 = vpop.f32.mrf.mxu1 }
0x166b   :  { %v2758_v45 = vpop.f32.mrf.mxu1 }
0x166c   :  { %3597 = vmatprep.mubr.msk.f32.mxu1 %vm186_vm1, %v2758_v45 }
0x166d   :  { %3598 = vmatmul.mubr.msk.f32.vlgmr.msra.gmra.mxu1 %vm186_vm1, %v3594_v44 }
0x166e   :  { %3612 = vmatpush3.msra.mxu1 %v1606_v0 }
0x166f   :  { %3613 = vmatprep.subr.mxu1 %v1605_v2 }
0x1670   :  { %3614 = vmatpush3.msra.mxu1 %v1605_v2 }
0x1671   :  { %3615 = vmatprep.subr.mxu1 %v1604_v1 }
0x1672   :  { %3616 = vmatpush3.msra.mxu1 %v1604_v1 }
0x1673   :  { %3617 = vmatprep.subr.mxu1 %v1603_v3 }
0x1674   :  { %3618 = vmatpush3.msra.mxu1 %v1603_v3 }
0x1675   :  { %3619 = vmatprep.subr.mxu1 %v1602_v25 }
0x1676   :  { %3620 = vmatpush3.msra.mxu1 %v1602_v25 }
0x1677   :  { %3621 = vmatprep.subr.mxu1 %v1601_v27 }
0x1678   :  { %3622 = vmatpush3.msra.mxu1 %v1601_v27  ;;  %v3262_v27 = vld [vmem:[#allocation7 + $0x10] ss:$0 sm:$0xff] }
0x1679   :  { %3623 = vmatprep.subr.mxu1 %v1600_v20 }
0x167a   :  { %3624 = vmatpush3.msra.mxu1 %v1600_v20 }
0x167b   :  { %3625 = vmatprep.subr.mxu1 %v1599_v29 }
0x167c   :  { %3626 = vmatpush3.msra.mxu1 %v1599_v29 }
0x172d   :  { %v3599_v47 = vpop.f32.mrf.mxu1 }
0x172e   :  { %v2850_v48 = vadd.f32 %v3599_v47, %v2562_v40 }
0x172f   :  { %v2840_v49 = vpop.f32.mrf.mxu1 }
0x1730   :  { %v2856_v50 = vadd.f32 %v3251_v46, %v2850_v48  ;;  %v2849_v51 = vadd.f32 %v2840_v49, %v2561_v43 }
0x1732   :  { %v2855_v52 = vadd.f32 %v3251_v46, %v2849_v51  ;;  %v2858_v37 = vadd.f32 %v2856_v50, %v4054_v12 }
0x1734   :  { %v2862_v10 = vsel %vm96_vm0, %v2858_v37, 0.0  ;;  %v2857_v53 = vadd.f32 %v2855_v52, %v4052_v14  ;;  %v1597_v14 = vld [vmem:[#allocation5 + $0xf0] sm:$0xff] }
0x1735   :  { %2863 = vadd.xlane.f32.xlu0 %v2862_v10  ;;  %3602 = vmatprep.subr.mxu0 %v1597_v14 }
0x1736   :  { %v2859_v39 = vsel %vm96_vm0, %v2857_v53, 0.0  ;;  %3603 = vmatpush3.msra.mxu0 %v1597_v14 }
0x1737   :  { %2860 = vadd.xlane.f32.xlu1 %v2859_v39  ;;  %3604 = vmatprep.subr.mxu0 %v1596_v63 }
0x1738   :  { %3605 = vmatpush3.msra.mxu0 %v1596_v63 }
0x1739   :  { %3606 = vmatprep.subr.mxu0 %v1595_v5 }
0x173a   :  { %3607 = vmatpush3.msra.mxu0 %v1595_v5 }
0x17be   :  { %v2864_v54 = vpop.xlane.xlu0 %2863 }
0x17bf   :  { %v2866_v41 = vmul.f32 0.03125, %v2864_v54 }
0x17c0   :  { %v2861_v55 = vpop.xlane.xlu1 %2860 }
0x17c1   :  { %v2868_v56 = vsub.f32 %v2858_v37, %v2866_v41  ;;  %v2865_v57 = vmul.f32 0.03125, %v2861_v55 }
0x17c3   :  { %v2867_v58 = vsub.f32 %v2857_v53, %v2865_v57  ;;  %v2870_v59 = vmul.f32 %v2868_v56, %v2868_v56 }
0x17c5   :  { %v2874_v60 = vsel %vm96_vm0, %v2870_v59, 0.0  ;;  %v2869_v61 = vmul.f32 %v2867_v58, %v2867_v58 }
0x17c6   :  { %2875 = vadd.xlane.f32.xlu0 %v2874_v60  ;;  %v3260_v60 = vld [vmem:[#allocation7 + $0xe] ss:$0 sm:$0xff] }
0x17c7   :  { %v2871_v12 = vsel %vm96_vm0, %v2869_v61, 0.0 }
0x17c8   :  { %2872 = vadd.xlane.f32.xlu1 %v2871_v12 }
0x184f   :  { %v2876_v4 = vpop.xlane.xlu0 %2875 }
0x1850   :  { %v2878_v6 = vmul.f32 0.03125, %v2876_v4 }
0x1851   :  { %v2873_v7 = vpop.xlane.xlu1 %2872 }
0x1852   :  { %v2880_v9 = vadd.f32 1e-05, %v2878_v6  ;;  %v2877_v28 = vmul.f32 0.03125, %v2873_v7 }
0x1854   :  { %3719 = vrsqrt.f32 %v2880_v9  ;;  %v2879_v11 = vadd.f32 1e-05, %v2877_v28 }
0x1856   :  { %3721 = vrsqrt.f32 %v2879_v11 }
0x1861   :  { %v3720_v13 = vpop.eup %3719 }
0x1862   :  { %v2884_v16 = vmul.f32 %v3720_v13, %v2868_v56 }
0x1863   :  { %v3722_v17 = vpop.eup %3721 }
0x1864   :  { %v2883_v18 = vmul.f32 %v3722_v17, %v2867_v58  ;;  %v2890_v21 = vmul.f32 %v3252_v15, %v2884_v16 }
0x1866   :  { %v2889_v22 = vmul.f32 %v3252_v15, %v2883_v18  ;;  %v2896_v24 = vadd.f32 %v3253_v8, %v2890_v21 }
0x1868   :  { %v2895_v23 = vadd.f32 %v3253_v8, %v2889_v22 }
0x186a   :  { %3608 = vmatprep.mubr.msk.f32.mxu0 %vm96_vm0, %v2895_v23 }
0x186b   :  { %3609 = vmatmul.mubr.msk.f32.vlgmr.msra.gmra.mxu0 %vm96_vm0, %v2896_v24 }
0x192b   :  { %v3610_v31 = vpop.f32.mrf.mxu0 }
0x192c   :  { %v2979_v32 = vadd.f32 %v3610_v31, %v3254_v30 }
0x192d   :  { %v2973_v26 = vpop.f32.mrf.mxu0 }
0x192e   :  { %v2974_v19 = vadd.f32 %v3254_v30, %v2973_v26  ;;  %v2983_v34 = vmax.f32 %v2979_v32, 0.0  ;;  %v3263_v30 = vld [vmem:[#allocation7 + $0x11] ss:$0 sm:$0xff] }
0x1930   :  { %v2982_v33 = vmax.f32 %v2974_v19, 0.0 }
0x1932   :  { %3627 = vmatprep.mubr.msk.f32.mxu1 %vm1468_vm5, %v2982_v33 }
0x1933   :  { %3628 = vmatmul.mubr.msk.f32.vlgmr.msra.gmra.mxu1 %vm1468_vm5, %v2983_v34 }
0x19f3   :  { %v3629_v36 = vpop.f32.mrf.mxu1 }
0x19f4   :  { %v3066_v38 = vadd.f32 %v3629_v36, %v3257_v35 }
0x19f5   :  { %v3060_v40 = vpop.f32.mrf.mxu1 }
0x19f6   :  { %v3061_v42 = vadd.f32 %v3257_v35, %v3060_v40  ;;  %v3070_v43 = vadd.f32 %v3066_v38, %v2896_v24 }
0x19f8   :  { %v3074_v44 = vsel %vm96_vm0, %v3070_v43, 0.0  ;;  %v3069_v45 = vadd.f32 %v3061_v42, %v2895_v23 }
0x19f9   :  { %3075 = vadd.xlane.f32.xlu0 %v3074_v44 }
0x19fa   :  { %v3071_v46 = vsel %vm96_vm0, %v3069_v45, 0.0 }
0x19fb   :  { %3072 = vadd.xlane.f32.xlu1 %v3071_v46 }
0x1a82   :  { %v3076_v47 = vpop.xlane.xlu0 %3075 }
0x1a83   :  { %v3078_v48 = vmul.f32 0.03125, %v3076_v47 }
0x1a84   :  { %v3073_v49 = vpop.xlane.xlu1 %3072 }
0x1a85   :  { %v3080_v50 = vsub.f32 %v3070_v43, %v3078_v48  ;;  %v3077_v51 = vmul.f32 0.03125, %v3073_v49 }
0x1a87   :  { %v3079_v52 = vsub.f32 %v3069_v45, %v3077_v51  ;;  %v3082_v37 = vmul.f32 %v3080_v50, %v3080_v50 }
0x1a89   :  { %v3086_v10 = vsel %vm96_vm0, %v3082_v37, 0.0  ;;  %v3081_v53 = vmul.f32 %v3079_v52, %v3079_v52 }
0x1a8a   :  { %3087 = vadd.xlane.f32.xlu0 %v3086_v10 }
0x1a8b   :  { %v3083_v39 = vsel %vm96_vm0, %v3081_v53, 0.0 }
0x1a8c   :  { %3084 = vadd.xlane.f32.xlu1 %v3083_v39 }
0x1b13   :  { %v3088_v54 = vpop.xlane.xlu0 %3087 }
0x1b14   :  { %v3090_v41 = vmul.f32 0.03125, %v3088_v54 }
0x1b15   :  { %v3085_v55 = vpop.xlane.xlu1 %3084 }
0x1b16   :  { %v3092_v56 = vadd.f32 1e-05, %v3090_v41  ;;  %v3089_v57 = vmul.f32 0.03125, %v3085_v55 }
0x1b18   :  { %3723 = vrsqrt.f32 %v3092_v56  ;;  %v3091_v58 = vadd.f32 1e-05, %v3089_v57 }
0x1b1a   :  { %3725 = vrsqrt.f32 %v3091_v58 }
0x1b25   :  { %v3724_v59 = vpop.eup %3723 }
0x1b26   :  { %v3096_v61 = vmul.f32 %v3724_v59, %v3080_v50 }
0x1b27   :  { %v3726_v12 = vpop.eup %3725 }
0x1b28   :  { %v3102_v14 = vmul.f32 %v3260_v60, %v3096_v61  ;;  %v3095_v63 = vmul.f32 %v3726_v12, %v3079_v52 }
0x1b2a   :  { %v3108_v5 = vadd.f32 %v3261_v62, %v3102_v14  ;;  %v3101_v0 = vmul.f32 %v3260_v60, %v3095_v63 }
0x1b2c   :  { %v3115_v2 = vsel %vm96_vm0, %v3108_v5, 0.0  ;;  %v3107_v1 = vadd.f32 %v3261_v62, %v3101_v0 }
0x1b2d   :  { %3116 = vadd.xlane.f32.xlu0 %v3115_v2 }
0x1b2e   :  { %v3112_v3 = vsel %vm96_vm0, %v3107_v1, 0.0 }
0x1b2f   :  { %3113 = vadd.xlane.f32.xlu1 %v3112_v3 }
0x1bb6   :  { %v3117_v4 = vpop.xlane.xlu0 %3116 }
0x1bb7   :  { %v3119_v6 = vmul.f32 0.03125, %v3117_v4 }
0x1bb8   :  { %v3114_v7 = vpop.xlane.xlu1 %3113 }
0x1bb9   :  { %v3121_v9 = vsub.f32 %v3108_v5, %v3119_v6  ;;  %v3118_v28 = vmul.f32 0.03125, %v3114_v7 }
0x1bbb   :  { %v3120_v11 = vsub.f32 %v3107_v1, %v3118_v28  ;;  %v3123_v13 = vmul.f32 %v3121_v9, %v3121_v9 }
0x1bbd   :  { %v3127_v15 = vsel %vm96_vm0, %v3123_v13, 0.0  ;;  %v3122_v16 = vmul.f32 %v3120_v11, %v3120_v11 }
0x1bbe   :  { %3128 = vadd.xlane.f32.xlu0 %v3127_v15 }
0x1bbf   :  { %v3124_v17 = vsel %vm96_vm0, %v3122_v16, 0.0 }
0x1bc0   :  { %3125 = vadd.xlane.f32.xlu1 %v3124_v17 }
0x1c47   :  { %v3129_v18 = vpop.xlane.xlu0 %3128 }
0x1c48   :  { %v3131_v21 = vmul.f32 0.03125, %v3129_v18 }
0x1c49   :  { %v3126_v8 = vpop.xlane.xlu1 %3125 }
0x1c4a   :  { %v3133_v22 = vadd.f32 1e-05, %v3131_v21  ;;  %v3130_v23 = vmul.f32 0.03125, %v3126_v8 }
0x1c4c   :  { %3727 = vrsqrt.f32 %v3133_v22  ;;  %v3132_v24 = vadd.f32 1e-05, %v3130_v23 }
0x1c4e   :  { %3729 = vrsqrt.f32 %v3132_v24 }
0x1c59   :  { %v3728_v25 = vpop.eup %3727 }
0x1c5a   :  { %v3137_v20 = vmul.f32 %v3728_v25, %v3121_v9 }
0x1c5b   :  { %v3730_v29 = vpop.eup %3729 }
0x1c5c   :  { %v3136_v31 = vmul.f32 %v3730_v29, %v3120_v11  ;;  %v3143_v32 = vmul.f32 %v3262_v27, %v3137_v20 }
0x1c5e   :  { %v3142_v26 = vmul.f32 %v3262_v27, %v3136_v31  ;;  %v3149_v19 = vadd.f32 %v3263_v30, %v3143_v32 }
0x1c60   :  { %v3148_v33 = vadd.f32 %v3263_v30, %v3142_v26  ;;  %3151 = vst.msk [vmem:[#allocation8 + $0x8] sm:$0xff] %vm96_vm0, %v3149_v19 }
0x1c62   :  { %3150 = vst.msk [vmem:[#allocation8] sm:$0xff] %vm96_vm0, %v3148_v33 }
0x1c63   :  { %3802 = shalt.err (!%p3799_p5)
}
0x1c64   :  { %3163 = dma.vmem_to_hbm [thread:$0]  %s3158_s11, 256, %s4239_s3, [#allocation4], %s3819_s17, %s3819_s17, %s3820_s18  }
0x1c65   :  { %3815 = dma.done.wait [#allocation4], 256  }
0x1c66   :  { %3816 = vsyncadd [#allocation4], 4294967040 }
0x1c67   :  { %3167 = vsyncpa [#allocation3], 1 }
0x1c68   :  { %3168 = vsyncpa [#allocation6], 1 }
0x1c69   :  { %3169 = vsyncpa [#allocation4], 1 }

</bundles_post_ra>
